<compile_context>
chip_gen: v6e
topology: v6e:2x2x1
jax: 0.10.0
libtpu: 0.0.40
codegen_flags: <defaults>
</compile_context>

<pallas_src>
import jax
import jax.numpy as jnp
from jax.experimental import pallas as pl
from jax.experimental.pallas import tpu as pltpu

H1, H2 = 256, 512
_MAX_TILE_B = 2048                 # multiple of 128; per-tile VMEM ~10-16 MiB
_VMEM_LIMIT = 48 * 1024 * 1024     # > 32 MiB scoped default, < v7x 64 MiB phys


def _leaky_relu(x, slope=0.2):
    return jnp.where(x > 0, x, slope * x)


def _round_up(x, m):
    return ((x + m - 1) // m) * m


def critic_kernel(x_ref, c_ref, w1x_ref, w1c_ref, b1_ref,
                  w2_ref, b2_ref, w3_ref, b3_ref, o_ref):
    # x_ref/c_ref: [TB, D] f32       w1x/w1c: [D, 256] bf16   b1: [1, 256] f32
    # w2: [256, 512] bf16            b2: [1, 512] f32
    # w3: [1, 512] bf16              b3: [1, 1] f32 (SMEM scalar)
    # o_ref: [1, TB] f32 (lane-packed output row)
    xb = x_ref[...].astype(jnp.bfloat16)
    cb = c_ref[...].astype(jnp.bfloat16)

    # Fused concat: [x | cond] @ w1 == x @ w1[:D] + cond @ w1[D:]
    h = jnp.dot(xb, w1x_ref[...], preferred_element_type=jnp.float32)
    h = h + jnp.dot(cb, w1c_ref[...], preferred_element_type=jnp.float32)
    h = _leaky_relu(h + b1_ref[...])                       # [TB, 256] f32

    h = jnp.dot(h.astype(jnp.bfloat16), w2_ref[...],
                preferred_element_type=jnp.float32)
    h = _leaky_relu(h + b2_ref[...])                       # [TB, 512] f32

    # Final N=1 layer: o[1, TB] = w3[1, 512] . h[TB, 512]^T (contract the last
    # dims of both operands, same pattern as attention q.k^T).  The batch ends
    # up on lanes, so the store is lane-dense with no broadcast/transpose.
    w3 = w3_ref[...].astype(jnp.float32)                   # [1, 512]
    o = jax.lax.dot_general(
        w3, h, dimension_numbers=(((1,), (1,)), ((), ())),
        preferred_element_type=jnp.float32)                # [1, TB]
    o_ref[...] = (o + b3_ref[0, 0]).astype(o_ref.dtype)


def _resident(shape):
    """Constant-index (grid-resident) block; single-buffered when supported."""
    index_map = lambda i: (0, 0)
    try:
        return pl.BlockSpec(shape, index_map, pipeline_mode=pl.Buffered(1))
    except (TypeError, ValueError, AttributeError):
        return pl.BlockSpec(shape, index_map)


def critic_forward(x, cond, params):
    """x, cond: [B, D] float32.  Returns [B, 1] float32."""
    w1, b1, w2, b2, w3, b3 = params
    B, D = x.shape
    assert cond.shape == (B, D)

    # Pre-split w1 for the fused concat; weights in bf16 (halves weight DMA,
    # bf16-native MXU).  Biases stay f32 (added post-accumulation on the VPU).
    w1x = w1[:D].astype(jnp.bfloat16)                 # [D, 256]
    w1c = w1[D:].astype(jnp.bfloat16)                 # [D, 256]
    w2b = w2.astype(jnp.bfloat16)                     # [256, 512]
    w3r = w3.reshape(1, H2).astype(jnp.bfloat16)      # [1, 512]
    b3s = b3.reshape(1, 1).astype(jnp.float32)        # scalar via SMEM

    # Batch tile: multiple of 128 (lane-packed output), large enough to
    # amortize per-grid-step overhead, and sized so mid/large batches give
    # >= 2 tiles (keeps both v7x TensorCores busy via the "parallel" axis).
    tile_b = min(_MAX_TILE_B, max(128, _round_up(pl.cdiv(B, 2), 128)))
    # keep the double-buffered f32 x/cond blocks bounded for very wide D
    rows_cap = max(128, (((8 << 20) // max(16 * D, 1)) // 128) * 128)
    tile_b = min(tile_b, rows_cap)
    b_pad = _round_up(B, tile_b)
    if b_pad != B:
        pad = ((0, b_pad - B), (0, 0))
        x = jnp.pad(x, pad)
        cond = jnp.pad(cond, pad)
    grid = (b_pad // tile_b,)

    flops = 2 * b_pad * (2 * D * H1 + H1 * H2 + H2)
    bytes_accessed = (
        (2 * D * H1 + H1 * H2 + H2) * 2        # bf16 weights (read once)
        + (H1 + H2 + 1) * 4                    # biases
        + b_pad * 2 * D * 4                    # x, cond (f32)
        + b_pad * 4)                           # lane-packed output row

    out = pl.pallas_call(
        critic_kernel,
        out_shape=jax.ShapeDtypeStruct((1, b_pad), jnp.float32),
        grid=grid,
        in_specs=[
            pl.BlockSpec((tile_b, D), lambda i: (i, 0)),          # x tile
            pl.BlockSpec((tile_b, D), lambda i: (i, 0)),          # cond tile
            _resident(w1x.shape),
            _resident(w1c.shape),
            _resident(b1.shape),
            _resident(w2b.shape),
            _resident(b2.shape),
            _resident(w3r.shape),
            pl.BlockSpec(memory_space=pltpu.MemorySpace.SMEM),    # b3 scalar
        ],
        out_specs=pl.BlockSpec((1, tile_b), lambda i: (0, i)),
        compiler_params=pltpu.CompilerParams(
            dimension_semantics=("parallel",),   # batch tiles independent
            vmem_limit_bytes=_VMEM_LIMIT),
        cost_estimate=pl.CostEstimate(
            flops=flops, transcendentals=0, bytes_accessed=bytes_accessed),
    )(x, cond, w1x, w1c, b1, w2b, b2, w3r, b3s)

    return out[0, :B].reshape(B, 1)


def init_params(key, input_dim):
    """Deterministic PyTorch-Linear-style init (uniform +-1/sqrt(fan_in)).
    Weights stored as [in, out] so the kernel computes x @ W + b."""
    dims = [(input_dim * 2, H1), (H1, H2), (H2, 1)]
    params = []
    for fan_in, fan_out in dims:
        key, kw, kb = jax.random.split(key, 3)
        bound = 1.0 / jnp.sqrt(float(fan_in))
        w = jax.random.uniform(kw, (fan_in, fan_out), jnp.float32, -bound, bound)
        b = jax.random.uniform(kb, (1, fan_out), jnp.float32, -bound, bound)
        params.extend([w, b])
    return tuple(params)


def reference_forward(x, cond, params):
    """Pure-JAX f32 reference for sanity checking."""
    w1, b1, w2, b2, w3, b3 = params
    h = jnp.concatenate([x, cond], axis=1)
    h = _leaky_relu(h @ w1 + b1)
    h = _leaky_relu(h @ w2 + b2)
    return h @ w3 + b3


if __name__ == "__main__":
    key = jax.random.PRNGKey(0)
    B, D = 8, 16  # small shapes: batch=8, input_dim=16

    key, kx, kc, kp = jax.random.split(key, 4)
    x = jax.random.normal(kx, (B, D), jnp.float32)
    cond = jax.random.normal(kc, (B, D), jnp.float32)
    params = init_params(kp, D)

    out = jax.block_until_ready(critic_forward(x, cond, params))
    ref = reference_forward(x, cond, params)

    assert out.shape == (B, 1)
    # bf16 MXU operands -> loosened tolerance vs the pure-f32 reference.
    assert jnp.allclose(out, ref, atol=5e-2, rtol=5e-2), "mismatch vs reference"

    print("KERNEL_OK")
</pallas_src>

<mosaic_0001>
module attributes {stable_mosaic.version = 11 : i64} {
  func.func @critic_kernel(%arg0: i32, %arg1: memref<128x16xf32, #tpu.memory_space<vmem>>, %arg2: memref<128x16xf32, #tpu.memory_space<vmem>>, %arg3: memref<16x256xbf16, #tpu.memory_space<vmem>>, %arg4: memref<16x256xbf16, #tpu.memory_space<vmem>>, %arg5: memref<1x256xf32, #tpu.memory_space<vmem>>, %arg6: memref<256x512xbf16, #tpu.memory_space<vmem>>, %arg7: memref<1x512xf32, #tpu.memory_space<vmem>>, %arg8: memref<1x512xbf16, #tpu.memory_space<vmem>>, %arg9: memref<1x1xf32, #tpu.memory_space<smem>>, %arg10: memref<1x128xf32, #tpu.memory_space<vmem>>) attributes {dimension_semantics = [#tpu.dimension_semantics<parallel>], iteration_bounds = array<i64: 1>, scalar_prefetch = 0 : i64, scratch_operands = 0 : i64, tpu.core_type = #tpu.core_type<tc>, window_params = [{transform_indices = @transform_0, window_bounds = array<i64: 128, 16>}, {transform_indices = @transform_1, window_bounds = array<i64: 128, 16>}, {pipeline_mode = #tpu.pipeline_mode<synchronous>, transform_indices = @transform_2, window_bounds = array<i64: 16, 256>}, {pipeline_mode = #tpu.pipeline_mode<synchronous>, transform_indices = @transform_3, window_bounds = array<i64: 16, 256>}, {pipeline_mode = #tpu.pipeline_mode<synchronous>, transform_indices = @transform_4, window_bounds = array<i64: 1, 256>}, {pipeline_mode = #tpu.pipeline_mode<synchronous>, transform_indices = @transform_5, window_bounds = array<i64: 256, 512>}, {pipeline_mode = #tpu.pipeline_mode<synchronous>, transform_indices = @transform_6, window_bounds = array<i64: 1, 512>}, {pipeline_mode = #tpu.pipeline_mode<synchronous>, transform_indices = @transform_7, window_bounds = array<i64: 1, 512>}, {transform_indices = @transform_8, window_bounds = array<i64: 1, 1>}, {transform_indices = @transform_9, window_bounds = array<i64: 1, 128>}]} {
    %c0 = arith.constant 0 : index
    %c0_0 = arith.constant 0 : index
    %0 = vector.load %arg1[%c0, %c0_0] : memref<128x16xf32, #tpu.memory_space<vmem>>, vector<128x16xf32>
    %1 = arith.truncf %0 : vector<128x16xf32> to vector<128x16xbf16>
    %c0_1 = arith.constant 0 : index
    %c0_2 = arith.constant 0 : index
    %2 = vector.load %arg2[%c0_1, %c0_2] : memref<128x16xf32, #tpu.memory_space<vmem>>, vector<128x16xf32>
    %3 = arith.truncf %2 : vector<128x16xf32> to vector<128x16xbf16>
    %c0_3 = arith.constant 0 : index
    %c0_4 = arith.constant 0 : index
    %4 = vector.load %arg3[%c0_3, %c0_4] : memref<16x256xbf16, #tpu.memory_space<vmem>>, vector<16x256xbf16>
    %cst = arith.constant dense<0.000000e+00> : vector<128x256xf32>
    %5 = tpu.matmul %1, %4, %cst {dimension_numbers = #tpu.dot_dimension_numbers<[1], [0], [0], [1], [0, 0, 1, 1], [], []>} : vector<128x16xbf16>, vector<16x256xbf16>, vector<128x256xf32> -> vector<128x256xf32>
    %c0_5 = arith.constant 0 : index
    %c0_6 = arith.constant 0 : index
    %6 = vector.load %arg4[%c0_5, %c0_6] : memref<16x256xbf16, #tpu.memory_space<vmem>>, vector<16x256xbf16>
    %cst_7 = arith.constant dense<0.000000e+00> : vector<128x256xf32>
    %7 = tpu.matmul %3, %6, %cst_7 {dimension_numbers = #tpu.dot_dimension_numbers<[1], [0], [0], [1], [0, 0, 1, 1], [], []>} : vector<128x16xbf16>, vector<16x256xbf16>, vector<128x256xf32> -> vector<128x256xf32>
    %8 = arith.addf %5, %7 : vector<128x256xf32>
    %c0_8 = arith.constant 0 : index
    %c0_9 = arith.constant 0 : index
    %9 = vector.load %arg5[%c0_8, %c0_9] : memref<1x256xf32, #tpu.memory_space<vmem>>, vector<1x256xf32>
    %10 = vector.broadcast %9 : vector<1x256xf32> to vector<128x256xf32>
    %11 = arith.addf %8, %10 : vector<128x256xf32>
    %cst_10 = arith.constant 0.000000e+00 : f32
    %12 = vector.broadcast %cst_10 : f32 to vector<128x256xf32>
    %13 = arith.cmpf ogt, %11, %12 : vector<128x256xf32>
    %cst_11 = arith.constant 2.000000e-01 : f32
    %14 = vector.broadcast %cst_11 : f32 to vector<128x256xf32>
    %15 = arith.mulf %14, %11 : vector<128x256xf32>
    %16 = arith.select %13, %11, %15 : vector<128x256xi1>, vector<128x256xf32>
    %17 = arith.truncf %16 : vector<128x256xf32> to vector<128x256xbf16>
    %c0_12 = arith.constant 0 : index
    %c0_13 = arith.constant 0 : index
    %18 = vector.load %arg6[%c0_12, %c0_13] : memref<256x512xbf16, #tpu.memory_space<vmem>>, vector<256x512xbf16>
    %cst_14 = arith.constant dense<0.000000e+00> : vector<128x512xf32>
    %19 = tpu.matmul %17, %18, %cst_14 {dimension_numbers = #tpu.dot_dimension_numbers<[1], [0], [0], [1], [0, 0, 1, 1], [], []>} : vector<128x256xbf16>, vector<256x512xbf16>, vector<128x512xf32> -> vector<128x512xf32>
    %c0_15 = arith.constant 0 : index
    %c0_16 = arith.constant 0 : index
    %20 = vector.load %arg7[%c0_15, %c0_16] : memref<1x512xf32, #tpu.memory_space<vmem>>, vector<1x512xf32>
    %21 = vector.broadcast %20 : vector<1x512xf32> to vector<128x512xf32>
    %22 = arith.addf %19, %21 : vector<128x512xf32>
    %cst_17 = arith.constant 0.000000e+00 : f32
    %23 = vector.broadcast %cst_17 : f32 to vector<128x512xf32>
    %24 = arith.cmpf ogt, %22, %23 : vector<128x512xf32>
    %cst_18 = arith.constant 2.000000e-01 : f32
    %25 = vector.broadcast %cst_18 : f32 to vector<128x512xf32>
    %26 = arith.mulf %25, %22 : vector<128x512xf32>
    %27 = arith.select %24, %22, %26 : vector<128x512xi1>, vector<128x512xf32>
    %c0_19 = arith.constant 0 : index
    %c0_20 = arith.constant 0 : index
    %28 = vector.load %arg8[%c0_19, %c0_20] : memref<1x512xbf16, #tpu.memory_space<vmem>>, vector<1x512xbf16>
    %29 = arith.extf %28 : vector<1x512xbf16> to vector<1x512xf32>
    %cst_21 = arith.constant dense<0.000000e+00> : vector<1x128xf32>
    %30 = tpu.matmul %29, %27, %cst_21 {dimension_numbers = #tpu.dot_dimension_numbers<[1], [1], [0], [0], [0, 0, 1, 0], [], []>} : vector<1x512xf32>, vector<128x512xf32>, vector<1x128xf32> -> vector<1x128xf32>
    %c0_22 = arith.constant 0 : index
    %c0_23 = arith.constant 0 : index
    %31 = memref.load %arg9[%c0_22, %c0_23] : memref<1x1xf32, #tpu.memory_space<smem>>
    %32 = vector.broadcast %31 : f32 to vector<1x128xf32>
    %33 = arith.addf %30, %32 : vector<1x128xf32>
    %c0_24 = arith.constant 0 : index
    %c0_25 = arith.constant 0 : index
    %34 = vector.load %arg10[%c0_24, %c0_25] : memref<1x128xf32, #tpu.memory_space<vmem>>, vector<1x128xf32>
    tpu.vector_store %arg10[%c0_24, %c0_25], %33 {strides = array<i32>} : memref<1x128xf32, #tpu.memory_space<vmem>>, vector<1x128xf32>,
    return
  }
  func.func @transform_0(%arg0: i32) -> (i32, i32) {
    %c0_i32 = arith.constant 0 : i32
    %c0_i32_0 = arith.constant 0 : i32
    return %arg0, %c0_i32 : i32, i32
  }
  func.func @transform_1(%arg0: i32) -> (i32, i32) {
    %c0_i32 = arith.constant 0 : i32
    %c0_i32_0 = arith.constant 0 : i32
    return %arg0, %c0_i32 : i32, i32
  }
  func.func @transform_2(%arg0: i32) -> (i32, i32) {
    %c0_i32 = arith.constant 0 : i32
    %c0_i32_0 = arith.constant 0 : i32
    %c0_i32_1 = arith.constant 0 : i32
    return %c0_i32, %c0_i32_0 : i32, i32
  }
  func.func @transform_3(%arg0: i32) -> (i32, i32) {
    %c0_i32 = arith.constant 0 : i32
    %c0_i32_0 = arith.constant 0 : i32
    %c0_i32_1 = arith.constant 0 : i32
    return %c0_i32, %c0_i32_0 : i32, i32
  }
  func.func @transform_4(%arg0: i32) -> (i32, i32) {
    %c0_i32 = arith.constant 0 : i32
    %c0_i32_0 = arith.constant 0 : i32
    %c0_i32_1 = arith.constant 0 : i32
    return %c0_i32, %c0_i32_0 : i32, i32
  }
  func.func @transform_5(%arg0: i32) -> (i32, i32) {
    %c0_i32 = arith.constant 0 : i32
    %c0_i32_0 = arith.constant 0 : i32
    %c0_i32_1 = arith.constant 0 : i32
    return %c0_i32, %c0_i32_0 : i32, i32
  }
  func.func @transform_6(%arg0: i32) -> (i32, i32) {
    %c0_i32 = arith.constant 0 : i32
    %c0_i32_0 = arith.constant 0 : i32
    %c0_i32_1 = arith.constant 0 : i32
    return %c0_i32, %c0_i32_0 : i32, i32
  }
  func.func @transform_7(%arg0: i32) -> (i32, i32) {
    %c0_i32 = arith.constant 0 : i32
    %c0_i32_0 = arith.constant 0 : i32
    %c0_i32_1 = arith.constant 0 : i32
    return %c0_i32, %c0_i32_0 : i32, i32
  }
  func.func @transform_8(%arg0: i32) -> (i32, i32) {
    %c0_i32 = arith.constant 0 : i32
    %c0_i32_0 = arith.constant 0 : i32
    %c0_i32_1 = arith.constant 0 : i32
    return %c0_i32, %c0_i32_0 : i32, i32
  }
  func.func @transform_9(%arg0: i32) -> (i32, i32) {
    %c0_i32 = arith.constant 0 : i32
    %c0_i32_0 = arith.constant 0 : i32
    return %c0_i32, %arg0 : i32, i32
  }
}

</mosaic_0001>

<bundles_post_ra>
// kernel: tpu_custom_call.1
= control target key start
LH: loop header
LB: loop body
LE: loop exit
PB: predicated region body
PF: predicated region fallthrough
CT: control target
= control target key end

     0   :  { %15 = vsyncpa [#allocation4], 0  ;;  %s2336_s0 = inlined_call_operand.vmem [shape: f32[128,16], index: 0, kind: input, shape index: {}]   ;;  %s2337_s1 = inlined_call_operand.vmem [shape: f32[128,16], index: 1, kind: input, shape index: {}]   ;;  %s2338_s2 = inlined_call_operand.vmem [shape: bf16[16,256], index: 2, kind: input, shape index: {}]   ;;  %s2339_s3 = inlined_call_operand.vmem [shape: bf16[16,256], index: 3, kind: input, shape index: {}]   ;;  %s2340_s4 = inlined_call_operand.vmem [shape: f32[1,256], index: 4, kind: input, shape index: {}]   ;;  %s2341_s5 = inlined_call_operand.hbm [shape: bf16[256,512], index: 5, kind: input, shape index: {}]   ;;  %s2342_s6 = inlined_call_operand.vmem [shape: f32[1,512], index: 6, kind: input, shape index: {}]   ;;  %s2343_s7 = inlined_call_operand.vmem [shape: bf16[1,512], index: 7, kind: input, shape index: {}]   ;;  %s2344_s8 = inlined_call_operand.<no memory space> [shape: f32[1,1], index: 8, kind: input, shape index: {}]   ;;  %s2345_s9 = inlined_call_operand.hbm [shape: f32[1,128], index: 9, kind: output, shape index: {}]  }
   0x1   :  { %16 = vsyncpa [#allocation5], 0  ;;  %s1792_s30 = smov [#allocation3]  }
   0x2   :  { %s32_s10 = sshll.u32 %s1792_s30, 4  ;;  %s33_s10 = int_to_ptr.vmem [resolvable:$true] %s32_s10 }
   0x3   :  { %s1756_s11 = scalar_lea.vmem %s33_s10, 8192  ;;  %p1761_p1 = scmp.lt.s32.totalorder %s33_s10, %s33_s10 }
   0x4   :  { %p1757_p0 = scmp.ne.s32.totalorder %s33_s10, %s1756_s11  ;;  %p1762_p2 = scmp.lt.s32.totalorder %s1756_s11, %s1756_s11 }
   0x6   :  { %p1763_p3 = por %p1762_p2, %p1761_p1 }
   0x8   :  { %p1764_p4 = pnand %p1763_p3, %p1757_p0 }
   0xa   :  { %1767 = shalt.err (!%p1764_p4)
}
   0xb   :  { %s1793_s12 = smov 256   ;;  %s1794_s13 = smov 16  }
   0xc   :  { %38 = dma.hbm_to_vmem [thread:$0]  %s2341_s5, 8192, %s33_s10, [#allocation4], %s1793_s12, %s1793_s12, %s1794_s13  }
   0xd   :  { %1788 = dma.done.wait [#allocation4], 8192  }
   0xe   :  { %1789 = vsyncadd [#allocation4], 4294959104  ;;  %v1795_v0 = vmov 0   ;;  %v1646_v1 = vld [vmem:[%s2339_s3 + $0x4] ss:$8 sps:$4 sm:$0xff]   ;;  %vm111_vm0 = vcmask 130048  }
   0xf   :  { %168 = vmatprep.mubr.bf16.mxu0 %v1795_v0  ;;  %315 = vmatprep.mubr.bf16.mxu1 %v1795_v0  ;;  %v1648_v2 = vld [vmem:[%s2338_s2 + $0x4] ss:$8 sps:$4 sm:$0xff]   ;;  %v1650_v3 = vld [vmem:[%s2339_s3] ss:$8 sps:$4 sm:$0xff]   ;;  %v75_v11 = vld [vmem:[%s2337_s1 + $0x10] sm:$0xff]  ;;  %s1796_s19 = smov [#allocation6]  }
  0x10   :  { %150 = vmatprep.subr.bf16.mxu0 %v1646_v1  ;;  %v1651_v4 = vld [vmem:[%s2338_s2] ss:$8 sps:$4 sm:$0xff]   ;;  %297 = vmatprep.subr.bf16.mxu1 %v1648_v2  ;;  %v76_v12 = vld [vmem:[%s2337_s1 + $0x18] sm:$0xff]  ;;  %v51_v13 = vld [vmem:[%s2336_s0 + $0x10] sm:$0xff]  ;;  %s1548_s20 = sshll.u32 %s1796_s19, 4  ;;  %s1549_s20 = int_to_ptr.vmem [resolvable:$true] %s1548_s20 }
  0x11   :  { %v73_v5 = vld [vmem:[%s2337_s1] sm:$0xff]  ;;  %v74_v6 = vld [vmem:[%s2337_s1 + $0x8] sm:$0xff]  ;;  %151 = vmatpush1.bf16.msra.mxu0 %v1650_v3  ;;  %298 = vmatpush1.bf16.msra.mxu1 %v1651_v4  ;;  %v52_v14 = vld [vmem:[%s2336_s0 + $0x18] sm:$0xff]  ;;  %v90_v15 = vpack.c.bf16 %v76_v12, %v75_v11  ;;  %s1768_s21 = scalar_lea.vmem %s1549_s20, 16  ;;  %s1772_s5 = scalar_lea.vmem %s1549_s20, 32 }
  0x12   :  { %v49_v7 = vld [vmem:[%s2336_s0] sm:$0xff]  ;;  %v50_v8 = vld [vmem:[%s2336_s0 + $0x8] sm:$0xff]  ;;  %v89_v9 = vpack.c.bf16 %v74_v6, %v73_v5  ;;  %v66_v16 = vpack.c.bf16 %v52_v14, %v51_v13  ;;  %v79_v33 = vld [vmem:[%s2337_s1 + $0x30] sm:$0xff]  ;;  %p1769_p5 = scmp.ne.s32.totalorder %s1549_s20, %s1768_s21  ;;  %p1773_p6 = scmp.lt.s32.totalorder %s1549_s20, %s1549_s20 }
  0x13   :  { %v65_v10 = vpack.c.bf16 %v50_v8, %v49_v7  ;;  %v77_v17 = vld [vmem:[%s2337_s1 + $0x20] sm:$0xff]  ;;  %v78_v18 = vld [vmem:[%s2337_s1 + $0x28] sm:$0xff]  ;;  %v80_v34 = vld [vmem:[%s2337_s1 + $0x38] sm:$0xff]  ;;  %p1774_p7 = scmp.lt.s32.totalorder %s1772_s5, %s1768_s21 }
  0x14   :  { %1559 = vmatmul.mubr.msk.bf16.vlgmr.msra.gmra.mxu0 %vm111_vm0, %v89_v9  ;;  %v53_v19 = vld [vmem:[%s2336_s0 + $0x20] sm:$0xff]  ;;  %v54_v20 = vld [vmem:[%s2336_s0 + $0x28] sm:$0xff]  ;;  %v91_v29 = vpack.c.bf16 %v78_v18, %v77_v17  ;;  %v55_v35 = vld [vmem:[%s2336_s0 + $0x30] sm:$0xff]  ;;  %v92_v43 = vpack.c.bf16 %v80_v34, %v79_v33 }
  0x15   :  { %1569 = vmatmul.mubr.msk.bf16.vlgmr.msra.gmra.mxu1 %vm111_vm0, %v65_v10  ;;  %178 = vmatprep.mubr.bf16.mxu0 %v1795_v0  ;;  %v1652_v21 = vld [vmem:[#allocation3 + $0xe0] ss:$16 sps:$4 sm:$0xff]   ;;  %v1654_v22 = vld [vmem:[#allocation3 + $0xe4] ss:$16 sps:$4 sm:$0xff]   ;;  %v1655_v23 = vld [vmem:[#allocation3 + $0xe8] ss:$16 sps:$4 sm:$0xff]   ;;  %v67_v30 = vpack.c.bf16 %v54_v20, %v53_v19  ;;  %p1775_p8 = por %p1774_p7, %p1773_p6 }
  0x16   :  { %325 = vmatprep.mubr.bf16.mxu1 %v1795_v0  ;;  %v1657_v24 = vld [vmem:[#allocation3 + $0xec] ss:$16 sps:$4 sm:$0xff]   ;;  %v1658_v25 = vld [vmem:[#allocation3 + $0xc0] ss:$16 sps:$4 sm:$0xff]   ;;  %958 = vmatprep.subr.bf16.mxu0 %v1654_v22  ;;  %v1660_v26 = vld [vmem:[#allocation3 + $0xc4] ss:$16 sps:$4 sm:$0xff]  }
  0x17   :  { %1071 = vmatprep.subr.bf16.mxu1 %v1657_v24  ;;  %959 = vmatpush1.bf16.msra.mxu0 %v1652_v21  ;;  %v1661_v27 = vld [vmem:[#allocation3 + $0xc8] ss:$16 sps:$4 sm:$0xff]   ;;  %v1663_v28 = vld [vmem:[#allocation3 + $0xcc] ss:$16 sps:$4 sm:$0xff]   ;;  %v1666_v31 = vld [vmem:[#allocation3 + $0xa4] ss:$16 sps:$4 sm:$0xff]   ;;  %p1776_p9 = pnand %p1775_p8, %p1769_p5 }
  0x18   :  { %1072 = vmatpush1.bf16.msra.mxu1 %v1655_v23  ;;  %960 = vmatprep.subr.bf16.mxu0 %v1660_v26  ;;  %v1669_v32 = vld [vmem:[#allocation3 + $0xac] ss:$16 sps:$4 sm:$0xff]   ;;  %v1664_v36 = vld [vmem:[#allocation3 + $0xa0] ss:$16 sps:$4 sm:$0xff]   ;;  %v1667_v37 = vld [vmem:[#allocation3 + $0xa8] ss:$16 sps:$4 sm:$0xff]  }
  0x19   :  { %1073 = vmatprep.subr.bf16.mxu1 %v1663_v28  ;;  %v1672_v38 = vld [vmem:[#allocation3 + $0x84] ss:$16 sps:$4 sm:$0xff]   ;;  %v1675_v39 = vld [vmem:[#allocation3 + $0x8c] ss:$16 sps:$4 sm:$0xff]   ;;  %v1670_v41 = vld [vmem:[#allocation3 + $0x80] ss:$16 sps:$4 sm:$0xff]  }
  0x1a   :  { %v56_v40 = vld [vmem:[%s2336_s0 + $0x38] sm:$0xff]  ;;  %v1678_v45 = vld [vmem:[#allocation3 + $0x64] ss:$16 sps:$4 sm:$0xff]   ;;  %v82_v48 = vld [vmem:[%s2337_s1 + $0x48] sm:$0xff] }
  0x1b   :  { %961 = vmatpush1.bf16.msra.mxu0 %v1658_v25  ;;  %v1673_v42 = vld [vmem:[#allocation3 + $0x88] ss:$16 sps:$4 sm:$0xff]   ;;  %v68_v44 = vpack.c.bf16 %v56_v40, %v55_v35  ;;  %v1681_v46 = vld [vmem:[#allocation3 + $0x6c] ss:$16 sps:$4 sm:$0xff]   ;;  %v81_v47 = vld [vmem:[%s2337_s1 + $0x40] sm:$0xff] }
  0x1c   :  { %1560 = vmatmul.mubr.msk.bf16.gmra.mxu0 %vm111_vm0, %v90_v15  ;;  %1074 = vmatpush1.bf16.msra.mxu1 %v1661_v27  ;;  %v57_v49 = vld [vmem:[%s2336_s0 + $0x40] sm:$0xff]  ;;  %v1679_v51 = vld [vmem:[#allocation3 + $0x68] ss:$16 sps:$4 sm:$0xff]   ;;  %v1687_v53 = vld [vmem:[#allocation3 + $0x4c] ss:$16 sps:$4 sm:$0xff]   ;;  %v93_v57 = vpack.c.bf16 %v82_v48, %v81_v47 }
  0x1d   :  { %1570 = vmatmul.mubr.msk.bf16.gmra.mxu1 %vm111_vm0, %v66_v16  ;;  %188 = vmatprep.mubr.bf16.mxu0 %v1795_v0  ;;  %v1676_v50 = vld [vmem:[#allocation3 + $0x60] ss:$16 sps:$4 sm:$0xff]   ;;  %v1684_v52 = vld [vmem:[#allocation3 + $0x44] ss:$16 sps:$4 sm:$0xff]   ;;  %v58_v54 = vld [vmem:[%s2336_s0 + $0x48] sm:$0xff] }
  0x1e   :  { %335 = vmatprep.mubr.bf16.mxu1 %v1795_v0  ;;  %962 = vmatprep.subr.bf16.mxu0 %v1666_v31  ;;  %v1682_v55 = vld [vmem:[#allocation3 + $0x40] ss:$16 sps:$4 sm:$0xff]   ;;  %v1685_v56 = vld [vmem:[#allocation3 + $0x48] ss:$16 sps:$4 sm:$0xff]   ;;  %v69_v58 = vpack.c.bf16 %v58_v54, %v57_v49  ;;  %v1690_v59 = vld [vmem:[#allocation3 + $0x24] ss:$16 sps:$4 sm:$0xff]  }
  0x1f   :  { %1075 = vmatprep.subr.bf16.mxu1 %v1669_v32  ;;  %963 = vmatpush1.bf16.msra.mxu0 %v1664_v36  ;;  %v1693_v60 = vld [vmem:[#allocation3 + $0x2c] ss:$16 sps:$4 sm:$0xff]   ;;  %v83_v61 = vld [vmem:[%s2337_s1 + $0x50] sm:$0xff]  ;;  %v1691_v2 = vld [vmem:[#allocation3 + $0x28] ss:$16 sps:$4 sm:$0xff]  }
  0x20   :  { %1076 = vmatpush1.bf16.msra.mxu1 %v1667_v37  ;;  %964 = vmatprep.subr.bf16.mxu0 %v1672_v38  ;;  %v84_v62 = vld [vmem:[%s2337_s1 + $0x58] sm:$0xff]  ;;  %v59_v63 = vld [vmem:[%s2336_s0 + $0x50] sm:$0xff]  ;;  %v85_v16 = vld [vmem:[%s2337_s1 + $0x60] sm:$0xff] }
  0x21   :  { %1077 = vmatprep.subr.bf16.mxu1 %v1675_v39  ;;  %v1688_v1 = vld [vmem:[#allocation3 + $0x20] ss:$16 sps:$4 sm:$0xff]   ;;  %v1696_v3 = vld [vmem:[#allocation3 + $0x4] ss:$16 sps:$4 sm:$0xff]   ;;  %v1699_v4 = vld [vmem:[#allocation3 + $0xc] ss:$16 sps:$4 sm:$0xff]   ;;  %v94_v8 = vpack.c.bf16 %v84_v62, %v83_v61 }
  0x22   :  { %v60_v5 = vld [vmem:[%s2336_s0 + $0x58] sm:$0xff]  ;;  %v1694_v6 = vld [vmem:[#allocation3] ss:$16 sps:$4 sm:$0xff]   ;;  %v1702_v10 = vld [vmem:[#allocation3 + $0x1e4] ss:$16 sps:$4 sm:$0xff]  }
  0x23   :  { %965 = vmatpush1.bf16.msra.mxu0 %v1670_v41  ;;  %v1697_v7 = vld [vmem:[#allocation3 + $0x8] ss:$16 sps:$4 sm:$0xff]   ;;  %v70_v9 = vpack.c.bf16 %v60_v5, %v59_v63  ;;  %v1700_v11 = vld [vmem:[#allocation3 + $0x1e0] ss:$16 sps:$4 sm:$0xff]   ;;  %v1705_v13 = vld [vmem:[#allocation3 + $0x1ec] ss:$16 sps:$4 sm:$0xff]  }
  0x24   :  { %1561 = vmatmul.mubr.msk.bf16.gmra.mxu0 %vm111_vm0, %v91_v29  ;;  %1078 = vmatpush1.bf16.msra.mxu1 %v1673_v42  ;;  %v1703_v12 = vld [vmem:[#allocation3 + $0x1e8] ss:$16 sps:$4 sm:$0xff]   ;;  %v1708_v14 = vld [vmem:[#allocation3 + $0x1c4] ss:$16 sps:$4 sm:$0xff]   ;;  %v1711_v15 = vld [vmem:[#allocation3 + $0x1cc] ss:$16 sps:$4 sm:$0xff]  }
  0x25   :  { %1571 = vmatmul.mubr.msk.bf16.gmra.mxu1 %vm111_vm0, %v67_v30  ;;  %198 = vmatprep.mubr.bf16.mxu0 %v1795_v0  ;;  %v86_v17 = vld [vmem:[%s2337_s1 + $0x68] sm:$0xff]  ;;  %v61_v18 = vld [vmem:[%s2336_s0 + $0x60] sm:$0xff]  ;;  %v87_v28 = vld [vmem:[%s2337_s1 + $0x70] sm:$0xff] }
  0x26   :  { %345 = vmatprep.mubr.bf16.mxu1 %v1795_v0  ;;  %966 = vmatprep.subr.bf16.mxu0 %v1678_v45  ;;  %v62_v19 = vld [vmem:[%s2336_s0 + $0x68] sm:$0xff]  ;;  %v1706_v20 = vld [vmem:[#allocation3 + $0x1c0] ss:$16 sps:$4 sm:$0xff]   ;;  %v95_v22 = vpack.c.bf16 %v86_v17, %v85_v16  ;;  %v1714_v24 = vld [vmem:[#allocation3 + $0x1a4] ss:$16 sps:$4 sm:$0xff]  }
  0x27   :  { %1079 = vmatprep.subr.bf16.mxu1 %v1681_v46  ;;  %967 = vmatpush1.bf16.msra.mxu0 %v1676_v50  ;;  %v1709_v21 = vld [vmem:[#allocation3 + $0x1c8] ss:$16 sps:$4 sm:$0xff]   ;;  %v71_v23 = vpack.c.bf16 %v62_v19, %v61_v18  ;;  %v1717_v25 = vld [vmem:[#allocation3 + $0x1ac] ss:$16 sps:$4 sm:$0xff]   ;;  %v1712_v26 = vld [vmem:[#allocation3 + $0x1a0] ss:$16 sps:$4 sm:$0xff]  }
  0x28   :  { %1080 = vmatpush1.bf16.msra.mxu1 %v1679_v51  ;;  %968 = vmatprep.subr.bf16.mxu0 %v1684_v52  ;;  %v1715_v27 = vld [vmem:[#allocation3 + $0x1a8] ss:$16 sps:$4 sm:$0xff]   ;;  %v1720_v29 = vld [vmem:[#allocation3 + $0x184] ss:$16 sps:$4 sm:$0xff]   ;;  %v1723_v30 = vld [vmem:[#allocation3 + $0x18c] ss:$16 sps:$4 sm:$0xff]  }
  0x29   :  { %1081 = vmatprep.subr.bf16.mxu1 %v1687_v53  ;;  %v88_v31 = vld [vmem:[%s2337_s1 + $0x78] sm:$0xff]  ;;  %v63_v32 = vld [vmem:[%s2336_s0 + $0x70] sm:$0xff]  ;;  %v398_v53 = vlaneseq }
  0x2a   :  { %v64_v33 = vld [vmem:[%s2336_s0 + $0x78] sm:$0xff]  ;;  %v1718_v34 = vld [vmem:[#allocation3 + $0x180] ss:$16 sps:$4 sm:$0xff]   ;;  %v96_v36 = vpack.c.bf16 %v88_v31, %v87_v28  ;;  %v1726_v37 = vld [vmem:[#allocation3 + $0x164] ss:$16 sps:$4 sm:$0xff]  }
  0x2b   :  { %969 = vmatpush1.bf16.msra.mxu0 %v1682_v55  ;;  %v1721_v35 = vld [vmem:[#allocation3 + $0x188] ss:$16 sps:$4 sm:$0xff]   ;;  %v1729_v38 = vld [vmem:[#allocation3 + $0x16c] ss:$16 sps:$4 sm:$0xff]   ;;  %v1724_v39 = vld [vmem:[#allocation3 + $0x160] ss:$16 sps:$4 sm:$0xff]  }
  0x2c   :  { %1562 = vmatmul.mubr.msk.bf16.gmra.mxu0 %vm111_vm0, %v92_v43  ;;  %1082 = vmatpush1.bf16.msra.mxu1 %v1685_v56  ;;  %v1727_v40 = vld [vmem:[#allocation3 + $0x168] ss:$16 sps:$4 sm:$0xff]   ;;  %v1732_v41 = vld [vmem:[#allocation3 + $0x144] ss:$16 sps:$4 sm:$0xff]   ;;  %v1735_v42 = vld [vmem:[#allocation3 + $0x14c] ss:$16 sps:$4 sm:$0xff]  }
  0x2d   :  { %1572 = vmatmul.mubr.msk.bf16.gmra.mxu1 %vm111_vm0, %v68_v44  ;;  %208 = vmatprep.mubr.bf16.mxu0 %v1795_v0  ;;  %v1730_v43 = vld [vmem:[#allocation3 + $0x140] ss:$16 sps:$4 sm:$0xff]   ;;  %v1733_v44 = vld [vmem:[#allocation3 + $0x148] ss:$16 sps:$4 sm:$0xff]   ;;  %v1738_v45 = vld [vmem:[#allocation3 + $0x124] ss:$16 sps:$4 sm:$0xff]  }
  0x2e   :  { %355 = vmatprep.mubr.bf16.mxu1 %v1795_v0  ;;  %970 = vmatprep.subr.bf16.mxu0 %v1690_v59  ;;  %v1741_v46 = vld [vmem:[#allocation3 + $0x12c] ss:$16 sps:$4 sm:$0xff]   ;;  %v1736_v47 = vld [vmem:[#allocation3 + $0x120] ss:$16 sps:$4 sm:$0xff]   ;;  %v1739_v48 = vld [vmem:[#allocation3 + $0x128] ss:$16 sps:$4 sm:$0xff]  }
  0x2f   :  { %1083 = vmatprep.subr.bf16.mxu1 %v1693_v60  ;;  %971 = vmatpush1.bf16.msra.mxu0 %v1688_v1  ;;  %v1744_v49 = vld [vmem:[#allocation3 + $0x104] ss:$16 sps:$4 sm:$0xff]   ;;  %v1747_v50 = vld [vmem:[#allocation3 + $0x10c] ss:$16 sps:$4 sm:$0xff]   ;;  %v1742_v51 = vld [vmem:[#allocation3 + $0x100] ss:$16 sps:$4 sm:$0xff]  }
  0x30   :  { %1084 = vmatpush1.bf16.msra.mxu1 %v1691_v2  ;;  %972 = vmatprep.subr.bf16.mxu0 %v1696_v3  ;;  %v1745_v52 = vld [vmem:[#allocation3 + $0x108] ss:$16 sps:$4 sm:$0xff]   ;;  %v1990_v54 = vshrl.u32 %v398_v53, 7  ;;  %v396_v59 = vld [vmem:[%s2340_s4] sm:$0x3] }
  0x31   :  { %1085 = vmatprep.subr.bf16.mxu1 %v1699_v4 }
  0x32   :  { %2351 = vst [vmem:[#allocation9_spill] sm:$0xff] %v1990_v54  ;;  %v1993_v55 = vsub.s32 0, %v1990_v54  ;;  %v404_v56 = vsub.s32 1, %v1990_v54 }
  0x33   :  { %973 = vmatpush1.bf16.msra.mxu0 %v1694_v6 }
  0x34   :  { %1563 = vmatmul.mubr.msk.bf16.gmra.mxu0 %vm111_vm0, %v93_v57  ;;  %1086 = vmatpush1.bf16.msra.mxu1 %v1697_v7  ;;  %2352 = vst [vmem:[#allocation10_spill] sm:$0xff] %v1993_v55  ;;  %v2000_v63 = vrot.slane %v396_v59, %v1993_v55  ;;  %v2004_v2 = vrot.slane %v396_v59, %v404_v56 }
  0x35   :  { %1573 = vmatmul.mubr.msk.bf16.gmra.mxu1 %vm111_vm0, %v69_v58  ;;  %218 = vmatprep.mubr.bf16.mxu0 %v1795_v0 }
  0x36   :  { %365 = vmatprep.mubr.bf16.mxu1 %v1795_v0  ;;  %974 = vmatprep.subr.bf16.mxu0 %v1702_v10 }
  0x37   :  { %1087 = vmatprep.subr.bf16.mxu1 %v1705_v13  ;;  %975 = vmatpush2.bf16.msra.mxu0 %v1700_v11 }
  0x38   :  { %1088 = vmatpush2.bf16.msra.mxu1 %v1703_v12  ;;  %976 = vmatprep.subr.bf16.mxu0 %v1708_v14 }
  0x39   :  { %1089 = vmatprep.subr.bf16.mxu1 %v1711_v15 }
  0x3b   :  { %977 = vmatpush2.bf16.msra.mxu0 %v1706_v20 }
  0x3c   :  { %1564 = vmatmul.mubr.msk.bf16.gmra.mxu0 %vm111_vm0, %v94_v8  ;;  %1090 = vmatpush2.bf16.msra.mxu1 %v1709_v21 }
  0x3d   :  { %1574 = vmatmul.mubr.msk.bf16.gmra.mxu1 %vm111_vm0, %v70_v9  ;;  %228 = vmatprep.mubr.bf16.mxu0 %v1795_v0 }
  0x3e   :  { %375 = vmatprep.mubr.bf16.mxu1 %v1795_v0  ;;  %978 = vmatprep.subr.bf16.mxu0 %v1714_v24 }
  0x3f   :  { %1091 = vmatprep.subr.bf16.mxu1 %v1717_v25  ;;  %979 = vmatpush2.bf16.msra.mxu0 %v1712_v26 }
  0x40   :  { %1092 = vmatpush2.bf16.msra.mxu1 %v1715_v27  ;;  %980 = vmatprep.subr.bf16.mxu0 %v1720_v29 }
  0x41   :  { %1093 = vmatprep.subr.bf16.mxu1 %v1723_v30 }
  0x43   :  { %981 = vmatpush2.bf16.msra.mxu0 %v1718_v34 }
  0x44   :  { %1565 = vmatmul.mubr.msk.bf16.gmra.mxu0 %vm111_vm0, %v95_v22  ;;  %1094 = vmatpush2.bf16.msra.mxu1 %v1721_v35 }
  0x45   :  { %1575 = vmatmul.mubr.msk.bf16.gmra.mxu1 %vm111_vm0, %v71_v23  ;;  %238 = vmatprep.mubr.bf16.mxu0 %v1795_v0 }
  0x46   :  { %385 = vmatprep.mubr.bf16.mxu1 %v1795_v0  ;;  %v72_v0 = vpack.c.bf16 %v64_v33, %v63_v32  ;;  %982 = vmatprep.subr.bf16.mxu0 %v1726_v37 }
  0x47   :  { %1095 = vmatprep.subr.bf16.mxu1 %v1729_v38  ;;  %983 = vmatpush2.bf16.msra.mxu0 %v1724_v39 }
  0x48   :  { %1096 = vmatpush2.bf16.msra.mxu1 %v1727_v40  ;;  %984 = vmatprep.subr.bf16.mxu0 %v1732_v41 }
  0x49   :  { %1097 = vmatprep.subr.bf16.mxu1 %v1735_v42 }
  0x4b   :  { %985 = vmatpush2.bf16.msra.mxu0 %v1730_v43 }
  0x4c   :  { %1566 = vmatmul.mubr.msk.bf16.gmra.mxu0 %vm111_vm0, %v96_v36  ;;  %1098 = vmatpush2.bf16.msra.mxu1 %v1733_v44 }
  0x4d   :  { %1576 = vmatmul.mubr.msk.bf16.gmra.mxu1 %vm111_vm0, %v72_v0  ;;  %986 = vmatprep.subr.bf16.mxu0 %v1738_v45 }
  0x4e   :  { %1099 = vmatprep.subr.bf16.mxu1 %v1741_v46 }
  0x4f   :  { %987 = vmatpush2.bf16.msra.mxu0 %v1736_v47 }
  0x50   :  { %1100 = vmatpush2.bf16.msra.mxu1 %v1739_v48  ;;  %988 = vmatprep.subr.bf16.mxu0 %v1744_v49 }
  0x51   :  { %1101 = vmatprep.subr.bf16.mxu1 %v1747_v50 }
  0x53   :  { %989 = vmatpush2.bf16.msra.mxu0 %v1742_v51 }
  0x54   :  { %1102 = vmatpush2.bf16.msra.mxu1 %v1745_v52 }
  0xd4   :  { %v170_v57 = vpop.f32.mrf.mxu0 }
  0xd5   :  { %v317_v58 = vpop.f32.mrf.mxu1 }
  0xd6   :  { %v172_v60 = vpop.f32.mrf.mxu0  ;;  %v318_v62 = vadd.f32 %v317_v58, %v170_v57 }
  0xd7   :  { %v319_v61 = vpop.f32.mrf.mxu1 }
  0xd8   :  { %v320_v1 = vadd.f32 %v319_v61, %v172_v60  ;;  %v174_v3 = vpop.f32.mrf.mxu0  ;;  %v408_v8 = vadd.f32 %v2000_v63, %v318_v62 }
  0xd9   :  { %v321_v4 = vpop.f32.mrf.mxu1 }
  0xda   :  { %v322_v5 = vadd.f32 %v321_v4, %v174_v3  ;;  %v176_v6 = vpop.f32.mrf.mxu0  ;;  %v409_v9 = vadd.f32 %v2004_v2, %v320_v1  ;;  %v472_v18 = vmul.f32 0.2, %v408_v8  ;;  %vm440_vm4 = vcmp.gt.f32.partialorder %v408_v8, 0.0 }
  0xdb   :  { %v323_v7 = vpop.f32.mrf.mxu1 }
  0xdc   :  { %v410_v10 = vadd.f32 %v2000_v63, %v322_v5  ;;  %v324_v11 = vadd.f32 %v323_v7, %v176_v6  ;;  %v180_v12 = vpop.f32.mrf.mxu0  ;;  %v473_v19 = vmul.f32 0.2, %v409_v9  ;;  %vm441_vm2 = vcmp.gt.f32.partialorder %v409_v9, 0.0 }
  0xdd   :  { %v327_v13 = vpop.f32.mrf.mxu1  ;;  %v504_v34 = vsel %vm440_vm4, %v408_v8, %v472_v18 }
  0xde   :  { %v474_v14 = vmul.f32 0.2, %v410_v10  ;;  %v411_v15 = vadd.f32 %v2004_v2, %v324_v11  ;;  %v182_v16 = vpop.f32.mrf.mxu0  ;;  %vm442_vm1 = vcmp.gt.f32.partialorder %v410_v10, 0.0  ;;  %v328_v22 = vadd.f32 %v327_v13, %v180_v12 }
  0xdf   :  { %v329_v17 = vpop.f32.mrf.mxu1  ;;  %v505_v33 = vsel %vm441_vm2, %v409_v9, %v473_v19 }
  0xe0   :  { %v330_v20 = vadd.f32 %v329_v17, %v182_v16  ;;  %vm443_vm3 = vcmp.gt.f32.partialorder %v411_v15, 0.0  ;;  %v475_v21 = vmul.f32 0.2, %v411_v15  ;;  %v184_v23 = vpop.f32.mrf.mxu0  ;;  %v506_v26 = vsel %vm442_vm1, %v410_v10, %v474_v14 }
  0xe1   :  { %v331_v24 = vpop.f32.mrf.mxu1  ;;  %v412_v35 = vadd.f32 %v2000_v63, %v328_v22  ;;  %v536_v38 = vpack.c.bf16 %v506_v26, %v504_v34 }
  0xe2   :  { %v332_v25 = vadd.f32 %v331_v24, %v184_v23  ;;  %v413_v27 = vadd.f32 %v2004_v2, %v330_v20  ;;  %v186_v28 = vpop.f32.mrf.mxu0  ;;  %v507_v30 = vsel %vm443_vm3, %v411_v15, %v475_v21 }
  0xe3   :  { %v333_v29 = vpop.f32.mrf.mxu1  ;;  %v537_v37 = vpack.c.bf16 %v507_v30, %v505_v33  ;;  %v476_v46 = vmul.f32 0.2, %v412_v35  ;;  %vm444_vm8 = vcmp.gt.f32.partialorder %v412_v35, 0.0 }
  0xe4   :  { %v414_v31 = vadd.f32 %v2000_v63, %v332_v25  ;;  %v334_v32 = vadd.f32 %v333_v29, %v186_v28  ;;  %v190_v36 = vpop.f32.mrf.mxu0  ;;  %v477_v40 = vmul.f32 0.2, %v413_v27  ;;  %vm445_vm7 = vcmp.gt.f32.partialorder %v413_v27, 0.0 }
  0xe5   :  { %v337_v0 = vpop.f32.mrf.mxu1  ;;  %990 = vmatprep.mubr.bf16.mxu0 %v537_v37  ;;  %1103 = vmatprep.mubr.bf16.mxu1 %v537_v37  ;;  %v508_v5 = vsel %vm444_vm8, %v412_v35, %v476_v46 }
  0xe6   :  { %v415_v39 = vadd.f32 %v2004_v2, %v334_v32  ;;  %v478_v41 = vmul.f32 0.2, %v414_v31  ;;  %v192_v42 = vpop.f32.mrf.mxu0  ;;  %vm446_vm5 = vcmp.gt.f32.partialorder %v414_v31, 0.0  ;;  %991 = vmatmul.mubr.bf16.vlgmr.msra.gmra.mxu0 %v536_v38  ;;  %1104 = vmatmul.mubr.bf16.vlgmr.msra.gmra.mxu1 %v536_v38  ;;  %v338_v47 = vadd.f32 %v337_v0, %v190_v36 }
  0xe7   :  { %v339_v43 = vpop.f32.mrf.mxu1  ;;  %v509_v61 = vsel %vm445_vm7, %v413_v27, %v477_v40 }
  0xe8   :  { %vm447_vm6 = vcmp.gt.f32.partialorder %v415_v39, 0.0  ;;  %v479_v44 = vmul.f32 0.2, %v415_v39  ;;  %v340_v45 = vadd.f32 %v339_v43, %v192_v42  ;;  %v194_v48 = vpop.f32.mrf.mxu0  ;;  %v510_v58 = vsel %vm446_vm5, %v414_v31, %v478_v41 }
  0xe9   :  { %v341_v49 = vpop.f32.mrf.mxu1  ;;  %v416_v62 = vadd.f32 %v2000_v63, %v338_v47  ;;  %v538_v7 = vpack.c.bf16 %v510_v58, %v508_v5 }
  0xea   :  { %v342_v50 = vadd.f32 %v341_v49, %v194_v48  ;;  %v417_v51 = vadd.f32 %v2004_v2, %v340_v45  ;;  %v196_v52 = vpop.f32.mrf.mxu0  ;;  %v511_v57 = vsel %vm447_vm6, %v415_v39, %v479_v44 }
  0xeb   :  { %v343_v53 = vpop.f32.mrf.mxu1  ;;  %v539_v4 = vpack.c.bf16 %v511_v57, %v509_v61  ;;  %v480_v14 = vmul.f32 0.2, %v416_v62  ;;  %vm448_vm12 = vcmp.gt.f32.partialorder %v416_v62, 0.0 }
  0xec   :  { %v418_v59 = vadd.f32 %v2000_v63, %v342_v50  ;;  %v344_v60 = vadd.f32 %v343_v53, %v196_v52  ;;  %v200_v1 = vpop.f32.mrf.mxu0  ;;  %v481_v8 = vmul.f32 0.2, %v417_v51  ;;  %vm449_vm11 = vcmp.gt.f32.partialorder %v417_v51, 0.0 }
  0xed   :  { %v347_v3 = vpop.f32.mrf.mxu1  ;;  %1000 = vmatprep.mubr.bf16.mxu0 %v539_v4  ;;  %1113 = vmatprep.mubr.bf16.mxu1 %v539_v4  ;;  %v512_v31 = vsel %vm448_vm12, %v416_v62, %v480_v14 }
  0xee   :  { %v419_v6 = vadd.f32 %v2004_v2, %v344_v60  ;;  %v482_v9 = vmul.f32 0.2, %v418_v59  ;;  %v202_v10 = vpop.f32.mrf.mxu0  ;;  %vm450_vm9 = vcmp.gt.f32.partialorder %v418_v59, 0.0  ;;  %1001 = vmatmul.mubr.bf16.gmra.mxu0 %v538_v7  ;;  %1114 = vmatmul.mubr.bf16.gmra.mxu1 %v538_v7  ;;  %v348_v15 = vadd.f32 %v347_v3, %v200_v1 }
  0xef   :  { %v349_v11 = vpop.f32.mrf.mxu1  ;;  %v513_v26 = vsel %vm449_vm11, %v417_v51, %v481_v8 }
  0xf0   :  { %vm451_vm10 = vcmp.gt.f32.partialorder %v419_v6, 0.0  ;;  %v483_v12 = vmul.f32 0.2, %v419_v6  ;;  %v350_v13 = vadd.f32 %v349_v11, %v202_v10  ;;  %v204_v16 = vpop.f32.mrf.mxu0  ;;  %v514_v23 = vsel %vm450_vm9, %v418_v59, %v482_v9 }
  0xf1   :  { %v351_v17 = vpop.f32.mrf.mxu1  ;;  %v420_v27 = vadd.f32 %v2000_v63, %v348_v15  ;;  %v540_v33 = vpack.c.bf16 %v514_v23, %v512_v31 }
  0xf2   :  { %v352_v18 = vadd.f32 %v351_v17, %v204_v16  ;;  %v421_v19 = vadd.f32 %v2004_v2, %v350_v13  ;;  %v206_v20 = vpop.f32.mrf.mxu0  ;;  %v515_v22 = vsel %vm451_vm10, %v419_v6, %v483_v12 }
  0xf3   :  { %v353_v21 = vpop.f32.mrf.mxu1  ;;  %v541_v30 = vpack.c.bf16 %v515_v22, %v513_v26  ;;  %v484_v39 = vmul.f32 0.2, %v420_v27  ;;  %vm452_vm0 = vcmp.gt.f32.partialorder %v420_v27, 0.0 }
  0xf4   :  { %v422_v24 = vadd.f32 %v2000_v63, %v352_v18  ;;  %v354_v25 = vadd.f32 %v353_v21, %v206_v20  ;;  %v210_v28 = vpop.f32.mrf.mxu0  ;;  %v485_v34 = vmul.f32 0.2, %v421_v19  ;;  %vm453_vm15 = vcmp.gt.f32.partialorder %v421_v19, 0.0 }
  0xf5   :  { %v357_v29 = vpop.f32.mrf.mxu1  ;;  %1010 = vmatprep.mubr.bf16.mxu0 %v541_v30  ;;  %1123 = vmatprep.mubr.bf16.mxu1 %v541_v30  ;;  %v516_v59 = vsel %vm452_vm0, %v420_v27, %v484_v39 }
  0xf6   :  { %v423_v32 = vadd.f32 %v2004_v2, %v354_v25  ;;  %v486_v35 = vmul.f32 0.2, %v422_v24  ;;  %v212_v36 = vpop.f32.mrf.mxu0  ;;  %vm454_vm13 = vcmp.gt.f32.partialorder %v422_v24, 0.0  ;;  %1011 = vmatmul.mubr.bf16.gmra.mxu0 %v540_v33  ;;  %1124 = vmatmul.mubr.bf16.gmra.mxu1 %v540_v33  ;;  %v358_v40 = vadd.f32 %v357_v29, %v210_v28 }
  0xf7   :  { %v359_v0 = vpop.f32.mrf.mxu1  ;;  %v517_v51 = vsel %vm453_vm15, %v421_v19, %v485_v34 }
  0xf8   :  { %vm455_vm14 = vcmp.gt.f32.partialorder %v423_v32, 0.0  ;;  %v487_v37 = vmul.f32 0.2, %v423_v32  ;;  %v360_v38 = vadd.f32 %v359_v0, %v212_v36  ;;  %v214_v41 = vpop.f32.mrf.mxu0  ;;  %v518_v48 = vsel %vm454_vm13, %v422_v24, %v486_v35 }
  0xf9   :  { %v361_v42 = vpop.f32.mrf.mxu1  ;;  %v424_v52 = vadd.f32 %v2000_v63, %v358_v40  ;;  %v542_v61 = vpack.c.bf16 %v518_v48, %v516_v59 }
  0xfa   :  { %v362_v43 = vadd.f32 %v361_v42, %v214_v41  ;;  %v425_v44 = vadd.f32 %v2004_v2, %v360_v38  ;;  %v216_v45 = vpop.f32.mrf.mxu0  ;;  %v519_v47 = vsel %vm455_vm14, %v423_v32, %v487_v37 }
  0xfb   :  { %v363_v46 = vpop.f32.mrf.mxu1  ;;  %v543_v58 = vpack.c.bf16 %v519_v47, %v517_v51  ;;  %v488_v7 = vmul.f32 0.2, %v424_v52  ;;  %vm456_vm4 = vcmp.gt.f32.partialorder %v424_v52, 0.0 }
  0xfc   :  { %v426_v49 = vadd.f32 %v2000_v63, %v362_v43  ;;  %v364_v50 = vadd.f32 %v363_v46, %v216_v45  ;;  %v220_v53 = vpop.f32.mrf.mxu0  ;;  %v489_v62 = vmul.f32 0.2, %v425_v44  ;;  %vm457_vm3 = vcmp.gt.f32.partialorder %v425_v44, 0.0 }
  0xfd   :  { %v367_v57 = vpop.f32.mrf.mxu1  ;;  %1020 = vmatprep.mubr.bf16.mxu0 %v543_v58  ;;  %1133 = vmatprep.mubr.bf16.mxu1 %v543_v58  ;;  %v520_v24 = vsel %vm456_vm4, %v424_v52, %v488_v7 }
  0xfe   :  { %v427_v60 = vadd.f32 %v2004_v2, %v364_v50  ;;  %v490_v1 = vmul.f32 0.2, %v426_v49  ;;  %v222_v3 = vpop.f32.mrf.mxu0  ;;  %vm458_vm1 = vcmp.gt.f32.partialorder %v426_v49, 0.0  ;;  %1021 = vmatmul.mubr.bf16.gmra.mxu0 %v542_v61  ;;  %1134 = vmatmul.mubr.bf16.gmra.mxu1 %v542_v61  ;;  %v368_v8 = vadd.f32 %v367_v57, %v220_v53 }
  0xff   :  { %v369_v4 = vpop.f32.mrf.mxu1  ;;  %v521_v19 = vsel %vm457_vm3, %v425_v44, %v489_v62 }
 0x100   :  { %vm459_vm2 = vcmp.gt.f32.partialorder %v427_v60, 0.0  ;;  %v491_v5 = vmul.f32 0.2, %v427_v60  ;;  %v370_v6 = vadd.f32 %v369_v4, %v222_v3  ;;  %v224_v9 = vpop.f32.mrf.mxu0  ;;  %v522_v16 = vsel %vm458_vm1, %v426_v49, %v490_v1 }
 0x101   :  { %v371_v10 = vpop.f32.mrf.mxu1  ;;  %v428_v20 = vadd.f32 %v2000_v63, %v368_v8  ;;  %v544_v26 = vpack.c.bf16 %v522_v16, %v520_v24 }
 0x102   :  { %v372_v11 = vadd.f32 %v371_v10, %v224_v9  ;;  %v429_v12 = vadd.f32 %v2004_v2, %v370_v6  ;;  %v226_v13 = vpop.f32.mrf.mxu0  ;;  %v523_v15 = vsel %vm459_vm2, %v427_v60, %v491_v5 }
 0x103   :  { %v373_v14 = vpop.f32.mrf.mxu1  ;;  %v545_v23 = vpack.c.bf16 %v523_v15, %v521_v19  ;;  %v492_v33 = vmul.f32 0.2, %v428_v20  ;;  %vm460_vm8 = vcmp.gt.f32.partialorder %v428_v20, 0.0 }
 0x104   :  { %v430_v17 = vadd.f32 %v2000_v63, %v372_v11  ;;  %v374_v18 = vadd.f32 %v373_v14, %v226_v13  ;;  %v230_v21 = vpop.f32.mrf.mxu0  ;;  %v493_v27 = vmul.f32 0.2, %v429_v12  ;;  %vm461_vm7 = vcmp.gt.f32.partialorder %v429_v12, 0.0 }
 0x105   :  { %v377_v22 = vpop.f32.mrf.mxu1  ;;  %1030 = vmatprep.mubr.bf16.mxu0 %v545_v23  ;;  %1143 = vmatprep.mubr.bf16.mxu1 %v545_v23  ;;  %v524_v49 = vsel %vm460_vm8, %v428_v20, %v492_v33 }
 0x106   :  { %v431_v25 = vadd.f32 %v2004_v2, %v374_v18  ;;  %v494_v28 = vmul.f32 0.2, %v430_v17  ;;  %v232_v29 = vpop.f32.mrf.mxu0  ;;  %vm462_vm5 = vcmp.gt.f32.partialorder %v430_v17, 0.0  ;;  %1031 = vmatmul.mubr.bf16.gmra.mxu0 %v544_v26  ;;  %1144 = vmatmul.mubr.bf16.gmra.mxu1 %v544_v26  ;;  %v378_v34 = vadd.f32 %v377_v22, %v230_v21  ;;  %v1376_v26 = vld [vmem:[%s2343_s7] sm:$0xf] }
 0x107   :  { %v379_v30 = vpop.f32.mrf.mxu1  ;;  %v525_v44 = vsel %vm461_vm7, %v429_v12, %v493_v27 }
 0x108   :  { %vm463_vm6 = vcmp.gt.f32.partialorder %v431_v25, 0.0  ;;  %v495_v31 = vmul.f32 0.2, %v431_v25  ;;  %v380_v32 = vadd.f32 %v379_v30, %v232_v29  ;;  %v234_v35 = vpop.f32.mrf.mxu0  ;;  %v526_v41 = vsel %vm462_vm5, %v430_v17, %v494_v28 }
 0x109   :  { %v381_v36 = vpop.f32.mrf.mxu1  ;;  %v432_v45 = vadd.f32 %v2000_v63, %v378_v34  ;;  %v546_v51 = vpack.c.bf16 %v526_v41, %v524_v49  ;;  %v2346_v28 = vsub.s32 2, %v1990_v54  ;;  %v2052_v30 = vunpack.c.l.bf16 %v1376_v26 }
 0x10a   :  { %v382_v0 = vadd.f32 %v381_v36, %v234_v35  ;;  %v433_v37 = vadd.f32 %v2004_v2, %v380_v32  ;;  %v236_v38 = vpop.f32.mrf.mxu0  ;;  %v527_v40 = vsel %vm463_vm6, %v431_v25, %v495_v31  ;;  %v1395_v31 = vsub.s32 6, %v1990_v54 }
 0x10b   :  { %v383_v39 = vpop.f32.mrf.mxu1  ;;  %v547_v48 = vpack.c.bf16 %v527_v40, %v525_v44  ;;  %v496_v61 = vmul.f32 0.2, %v432_v45  ;;  %vm464_vm12 = vcmp.gt.f32.partialorder %v432_v45, 0.0  ;;  %2355 = vst [vmem:[#allocation13_spill] sm:$0xff] %v2052_v30  ;;  %v1388_v34 = vrot.slane %v2052_v30, %v2346_v28 }
 0x10c   :  { %v434_v42 = vadd.f32 %v2000_v63, %v382_v0  ;;  %v384_v43 = vadd.f32 %v383_v39, %v236_v38  ;;  %v240_v46 = vpop.f32.mrf.mxu0  ;;  %v497_v52 = vmul.f32 0.2, %v433_v37  ;;  %vm465_vm11 = vcmp.gt.f32.partialorder %v433_v37, 0.0 }
 0x10d   :  { %v387_v47 = vpop.f32.mrf.mxu1  ;;  %1040 = vmatprep.mubr.bf16.mxu0 %v547_v48  ;;  %1153 = vmatprep.mubr.bf16.mxu1 %v547_v48  ;;  %v528_v15 = vsel %vm464_vm12, %v432_v45, %v496_v61  ;;  %v1396_v35 = vrot.slane %v2052_v30, %v1395_v31 }
 0x10e   :  { %v435_v50 = vadd.f32 %v2004_v2, %v384_v43  ;;  %v498_v53 = vmul.f32 0.2, %v434_v42  ;;  %v242_v57 = vpop.f32.mrf.mxu0  ;;  %vm466_vm9 = vcmp.gt.f32.partialorder %v434_v42, 0.0  ;;  %1041 = vmatmul.mubr.bf16.gmra.mxu0 %v546_v51  ;;  %1154 = vmatmul.mubr.bf16.gmra.mxu1 %v546_v51  ;;  %v388_v62 = vadd.f32 %v387_v47, %v240_v46 }
 0x10f   :  { %v389_v58 = vpop.f32.mrf.mxu1  ;;  %v529_v12 = vsel %vm465_vm11, %v433_v37, %v497_v52 }
 0x110   :  { %vm467_vm10 = vcmp.gt.f32.partialorder %v435_v50, 0.0  ;;  %v499_v59 = vmul.f32 0.2, %v435_v50  ;;  %v390_v60 = vadd.f32 %v389_v58, %v242_v57  ;;  %v244_v1 = vpop.f32.mrf.mxu0  ;;  %v530_v9 = vsel %vm466_vm9, %v434_v42, %v498_v53 }
 0x111   :  { %v391_v3 = vpop.f32.mrf.mxu1  ;;  %v436_v13 = vadd.f32 %v2000_v63, %v388_v62  ;;  %v548_v18 = vpack.c.bf16 %v530_v9, %v528_v15 }
 0x112   :  { %v437_v4 = vadd.f32 %v2004_v2, %v390_v60  ;;  %v392_v5 = vadd.f32 %v391_v3, %v244_v1  ;;  %v246_v6 = vpop.f32.mrf.mxu0  ;;  %v531_v8 = vsel %vm467_vm10, %v435_v50, %v499_v59 }
 0x113   :  { %v393_v7 = vpop.f32.mrf.mxu1  ;;  %v549_v14 = vpack.c.bf16 %v531_v8, %v529_v12  ;;  %v500_v21 = vmul.f32 0.2, %v436_v13  ;;  %vm468_vm0 = vcmp.gt.f32.partialorder %v436_v13, 0.0 }
 0x114   :  { %v438_v10 = vadd.f32 %v2000_v63, %v392_v5  ;;  %v394_v11 = vadd.f32 %v393_v7, %v246_v6  ;;  %v501_v16 = vmul.f32 0.2, %v437_v4  ;;  %vm469_vm13 = vcmp.gt.f32.partialorder %v437_v4, 0.0 }
 0x115   :  { %1050 = vmatprep.mubr.bf16.mxu0 %v549_v14  ;;  %1163 = vmatprep.mubr.bf16.mxu1 %v549_v14  ;;  %v532_v25 = vsel %vm468_vm0, %v436_v13, %v500_v21 }
 0x116   :  { %v439_v17 = vadd.f32 %v2004_v2, %v394_v11  ;;  %v502_v19 = vmul.f32 0.2, %v438_v10  ;;  %vm470_vm14 = vcmp.gt.f32.partialorder %v438_v10, 0.0  ;;  %1051 = vmatmul.mubr.bf16.gmra.mxu0 %v548_v18  ;;  %1164 = vmatmul.mubr.bf16.gmra.mxu1 %v548_v18  ;;  %v533_v22 = vsel %vm469_vm13, %v437_v4, %v501_v16 }
 0x118   :  { %vm471_vm15 = vcmp.gt.f32.partialorder %v439_v17, 0.0  ;;  %v503_v20 = vmul.f32 0.2, %v439_v17  ;;  %v534_v24 = vsel %vm470_vm14, %v438_v10, %v502_v19 }
 0x119   :  { %v550_v2 = vpack.c.bf16 %v534_v24, %v532_v25 }
 0x11a   :  { %v535_v23 = vsel %vm471_vm15, %v439_v17, %v503_v20 }
 0x11b   :  { %v551_v63 = vpack.c.bf16 %v535_v23, %v533_v22 }
 0x11d   :  { %1060 = vmatprep.mubr.bf16.mxu0 %v551_v63  ;;  %1173 = vmatprep.mubr.bf16.mxu1 %v551_v63 }
 0x11e   :  { %1061 = vmatmul.mubr.bf16.gmra.mxu0 %v550_v2  ;;  %1174 = vmatmul.mubr.bf16.gmra.mxu1 %v550_v2  ;;  %v632_v2 = vsub.s32 3, %v1990_v54 }
 0x11f   :  { %1465 = vmatprep.mubr.f32.mxu0 %v1388_v34  ;;  %1535 = vmatprep.mubr.f32.mxu1 %v1396_v35  ;;  %v616_v34 = vld [vmem:[%s2342_s6] sm:$0xf] }
 0x120   :  { %v2161_v30 = vrot.slane %v616_v34, %v404_v56 }
 0x1a6   :  { %v2047_v27 = vpop.f32.mrf.mxu0  ;;  %v2050_v29 = vpop.f32.mrf.mxu1 }
 0x1a7   :  { %2353 = vst [vmem:[#allocation11_spill] sm:$0xff] %v2047_v27  ;;  %2354 = vst [vmem:[#allocation12_spill] sm:$0xff] %v2050_v29  ;;  %v2163_v29 = vrot.slane %v616_v34, %v632_v2 }
 0x1a8   :  { %v2055_v32 = vpop.f32.mrf.mxu0  ;;  %v2057_v33 = vpop.f32.mrf.mxu1 }
 0x1a9   :  { %2356 = vst [vmem:[#allocation14_spill] sm:$0xff] %v2055_v32  ;;  %2357 = vst [vmem:[#allocation15_spill] sm:$0xff] %v2057_v33  ;;  %v2374_v33 = vsub.s32 2, %v1990_v54 }
 0x1aa   :  { %v2063_v36 = vpop.f32.mrf.mxu0  ;;  %v2065_v0 = vpop.f32.mrf.mxu1 }
 0x1ab   :  { %2358 = vst [vmem:[#allocation16_spill] sm:$0xff] %v2063_v36  ;;  %2359 = vst [vmem:[#allocation17_spill] sm:$0xff] %v2065_v0  ;;  %v2166_v36 = vrot.slane %v616_v34, %v1993_v55  ;;  %v2170_v32 = vrot.slane %v616_v34, %v2374_v33 }
 0x1ac   :  { %v2067_v37 = vpop.f32.mrf.mxu0  ;;  %v2069_v38 = vpop.f32.mrf.mxu1 }
 0x1ad   :  { %2360 = vst [vmem:[#allocation18_spill] sm:$0xff] %v2067_v37  ;;  %2361 = vst [vmem:[#allocation19_spill] sm:$0xff] %v2069_v38 }
 0x1ae   :  { %v2071_v39 = vpop.f32.mrf.mxu0  ;;  %v2073_v40 = vpop.f32.mrf.mxu1 }
 0x1af   :  { %2362 = vst [vmem:[#allocation20_spill] sm:$0xff] %v2071_v39  ;;  %2363 = vst [vmem:[#allocation21_spill] sm:$0xff] %v2073_v40 }
 0x1b0   :  { %v2075_v41 = vpop.f32.mrf.mxu0  ;;  %v2077_v42 = vpop.f32.mrf.mxu1 }
 0x1b1   :  { %2364 = vst [vmem:[#allocation22_spill] sm:$0xff] %v2075_v41  ;;  %2365 = vst [vmem:[#allocation23_spill] sm:$0xff] %v2077_v42 }
 0x1b2   :  { %v2079_v43 = vpop.f32.mrf.mxu0  ;;  %v2081_v44 = vpop.f32.mrf.mxu1 }
 0x1b3   :  { %2366 = vst [vmem:[#allocation24_spill] sm:$0xff] %v2079_v43  ;;  %2367 = vst [vmem:[#allocation25_spill] sm:$0xff] %v2081_v44 }
 0x1b4   :  { %v2083_v45 = vpop.f32.mrf.mxu0  ;;  %v2085_v46 = vpop.f32.mrf.mxu1 }
 0x1b5   :  { %2368 = vst [vmem:[#allocation26_spill] sm:$0xff] %v2083_v45  ;;  %2369 = vst [vmem:[#allocation27_spill] sm:$0xff] %v2085_v46 }
 0x1b6   :  { %v2087_v47 = vpop.f32.mrf.mxu0  ;;  %v2089_v48 = vpop.f32.mrf.mxu1 }
 0x1b7   :  { %2370 = vst [vmem:[#allocation28_spill] sm:$0xff] %v2087_v47  ;;  %2371 = vst [vmem:[#allocation29_spill] sm:$0xff] %v2089_v48 }
 0x1b8   :  { %v2091_v49 = vpop.f32.mrf.mxu0  ;;  %v2093_v50 = vpop.f32.mrf.mxu1 }
 0x1ba   :  { %v2095_v51 = vpop.f32.mrf.mxu0  ;;  %v2097_v52 = vpop.f32.mrf.mxu1 }
 0x1bb   :  { %2372 = vst [vmem:[#allocation30_spill] sm:$0xff] %v2095_v51  ;;  %2373 = vst [vmem:[#allocation31_spill] sm:$0xff] %v2097_v52 }
 0x1bc   :  { %v2099_v53 = vpop.f32.mrf.mxu0  ;;  %v2101_v57 = vpop.f32.mrf.mxu1 }
 0x1be   :  { %v2103_v58 = vpop.f32.mrf.mxu0  ;;  %v2105_v59 = vpop.f32.mrf.mxu1 }
 0x1c0   :  { %v2107_v60 = vpop.f32.mrf.mxu0  ;;  %v2109_v61 = vpop.f32.mrf.mxu1 }
 0x1c2   :  { %v2111_v62 = vpop.f32.mrf.mxu0  ;;  %v2113_v1 = vpop.f32.mrf.mxu1 }
 0x1c4   :  { %v2115_v3 = vpop.f32.mrf.mxu0  ;;  %v2117_v4 = vpop.f32.mrf.mxu1 }
 0x1c6   :  { %v2119_v5 = vpop.f32.mrf.mxu0  ;;  %v2121_v6 = vpop.f32.mrf.mxu1 }
 0x1c8   :  { %v2123_v7 = vpop.f32.mrf.mxu0  ;;  %v2125_v8 = vpop.f32.mrf.mxu1 }
 0x1ca   :  { %v2127_v9 = vpop.f32.mrf.mxu0  ;;  %v2129_v10 = vpop.f32.mrf.mxu1 }
 0x1cc   :  { %v2131_v11 = vpop.f32.mrf.mxu0  ;;  %v2133_v12 = vpop.f32.mrf.mxu1 }
 0x1ce   :  { %v2135_v13 = vpop.f32.mrf.mxu0  ;;  %v2137_v14 = vpop.f32.mrf.mxu1 }
 0x1d0   :  { %v2139_v15 = vpop.f32.mrf.mxu0  ;;  %v2141_v16 = vpop.f32.mrf.mxu1 }
 0x1d2   :  { %v2143_v17 = vpop.f32.mrf.mxu0  ;;  %v2145_v18 = vpop.f32.mrf.mxu1 }
 0x1d4   :  { %v2147_v19 = vpop.f32.mrf.mxu0  ;;  %v2149_v20 = vpop.f32.mrf.mxu1 }
 0x1d6   :  { %v2151_v21 = vpop.f32.mrf.mxu0  ;;  %v2153_v22 = vpop.f32.mrf.mxu1 }
 0x1d8   :  { %v1054_v23 = vpop.f32.mrf.mxu0  ;;  %v1167_v63 = vpop.f32.mrf.mxu1 }
 0x1d9   :  { %v2177_v44 = vadd.f32 %v1054_v23, %v2161_v30  ;;  %v2180_v55 = vadd.f32 %v1167_v63, %v2163_v29 }
 0x1da   :  { %v1056_v24 = vpop.f32.mrf.mxu0  ;;  %v1169_v25 = vpop.f32.mrf.mxu1 }
 0x1db   :  { %vm1233_vm13 = vcmp.gt.f32.partialorder %v2177_v44, 0.0  ;;  %vm1235_vm14 = vcmp.gt.f32.partialorder %v2180_v55, 0.0 }
 0x1dc   :  { %v1058_v26 = vpop.f32.mrf.mxu0  ;;  %v1171_v31 = vpop.f32.mrf.mxu1 }
 0x1dd   :  { %v1059_v33 = vadd.f32 %v1058_v26, %v2161_v30  ;;  %v1057_v26 = vadd.f32 %v1056_v24, %v2166_v36 }
 0x1de   :  { %v1062_v35 = vpop.f32.mrf.mxu0  ;;  %v1175_v28 = vpop.f32.mrf.mxu1 }
 0x1df   :  { %v1176_v34 = vadd.f32 %v1175_v28, %v2170_v32  ;;  %v1301_v28 = vmul.f32 0.2, %v1059_v33  ;;  %vm1237_vm9 = vcmp.gt.f32.partialorder %v1059_v33, 0.0  ;;  %vm1236_vm11 = vcmp.gt.f32.partialorder %v1057_v26, 0.0 }
 0x1e0   :  { %v1064_v27 = vpop.f32.mrf.mxu0  ;;  %v1177_v0 = vpop.f32.mrf.mxu1 }
 0x1e1   :  { %v1065_v40 = vadd.f32 %v1064_v27, %v2161_v30  ;;  %v1178_v39 = vadd.f32 %v1177_v0, %v2163_v29  ;;  %v1172_v27 = vadd.f32 %v1171_v31, %v2163_v29  ;;  %v1063_v0 = vadd.f32 %v1062_v35, %v2166_v36 }
 0x1e2   :  { %v1066_v38 = vpop.f32.mrf.mxu0  ;;  %v1179_v37 = vpop.f32.mrf.mxu1  ;;  %v1170_v31 = vadd.f32 %v1169_v25, %v2170_v32  ;;  %vm1242_vm8 = vcmp.gt.f32.partialorder %v1176_v34, 0.0 }
 0x1e3   :  { %v1067_v56 = vadd.f32 %v1066_v38, %v2166_v36  ;;  %v1180_v2 = vadd.f32 %v1179_v37, %v2170_v32  ;;  %v1305_v42 = vmul.f32 0.2, %v1065_v40  ;;  %v1307_v38 = vmul.f32 0.2, %v1178_v39 }
 0x1e4   :  { %v1068_v43 = vpop.f32.mrf.mxu0  ;;  %v1181_v54 = vpop.f32.mrf.mxu1  ;;  %vm1241_vm5 = vcmp.gt.f32.partialorder %v1065_v40, 0.0  ;;  %vm1243_vm6 = vcmp.gt.f32.partialorder %v1178_v39, 0.0  ;;  %v1303_v35 = vmul.f32 0.2, %v1172_v27  ;;  %v1304_v45 = vmul.f32 0.2, %v1063_v0 }
 0x1e5   :  { %v1069_v37 = vadd.f32 %v1068_v43, %v2161_v30  ;;  %v1182_v23 = vadd.f32 %v1181_v54, %v2163_v29  ;;  %vm1244_vm1 = vcmp.gt.f32.partialorder %v1067_v56, 0.0  ;;  %v1308_v41 = vmul.f32 0.2, %v1067_v56 }
 0x1e6   :  { %vm1246_vm2 = vcmp.gt.f32.partialorder %v1180_v2, 0.0  ;;  %v1310_v63 = vmul.f32 0.2, %v1180_v2  ;;  %v1306_v54 = vmul.f32 0.2, %v1176_v34  ;;  %vm1240_vm7 = vcmp.gt.f32.partialorder %v1063_v0, 0.0 }
 0x1e7   :  { %v1309_v48 = vmul.f32 0.2, %v1069_v37  ;;  %v1311_v47 = vmul.f32 0.2, %v1182_v23  ;;  %vm1245_vm3 = vcmp.gt.f32.partialorder %v1069_v37, 0.0  ;;  %vm1247_vm4 = vcmp.gt.f32.partialorder %v1182_v23, 0.0 }
 0x1e8   :  { %v1372_v52 = vsel %vm1244_vm1, %v1067_v56, %v1308_v41  ;;  %v1374_v51 = vsel %vm1246_vm2, %v1180_v2, %v1310_v63  ;;  %v1369_v24 = vsel %vm1241_vm5, %v1065_v40, %v1305_v42  ;;  %v1371_v25 = vsel %vm1243_vm6, %v1178_v39, %v1307_v38 }
 0x1e9   :  { %v1373_v46 = vsel %vm1245_vm3, %v1069_v37, %v1309_v48  ;;  %v1375_v43 = vsel %vm1247_vm4, %v1182_v23, %v1311_v47  ;;  %v1049_v48 = vadd.f32 %v2147_v19, %v2161_v30  ;;  %v1162_v47 = vadd.f32 %v2149_v20, %v2163_v29 }
 0x1ea   :  { %1401 = vmatprep.subr.mxu0 %v1373_v46  ;;  %1471 = vmatprep.subr.mxu1 %v1375_v43  ;;  %vm1239_vm10 = vcmp.gt.f32.partialorder %v1172_v27, 0.0  ;;  %v1053_v41 = vadd.f32 %v2151_v21, %v2166_v36  ;;  %v1166_v46 = vadd.f32 %v2153_v22, %v2170_v32  ;;  %v1297_v40 = vmul.f32 0.2, %v2177_v44 }
 0x1eb   :  { %1402 = vmatpush1.xpose.msra.mxu0 %v1372_v52  ;;  %1472 = vmatpush1.xpose.msra.mxu1 %v1374_v51  ;;  %v1299_v39 = vmul.f32 0.2, %v2180_v55  ;;  %v1300_v42 = vmul.f32 0.2, %v1057_v26  ;;  %v1302_v51 = vmul.f32 0.2, %v1170_v31  ;;  %v1368_v52 = vsel %vm1240_vm7, %v1063_v0, %v1304_v45 }
 0x1ec   :  { %1403 = vmatprep.subr.mxu0 %v1369_v24  ;;  %1473 = vmatprep.subr.mxu1 %v1371_v25  ;;  %v1370_v19 = vsel %vm1242_vm8, %v1176_v34, %v1306_v54  ;;  %vm1238_vm12 = vcmp.gt.f32.partialorder %v1170_v31, 0.0  ;;  %v1365_v20 = vsel %vm1237_vm9, %v1059_v33, %v1301_v28  ;;  %v1367_v56 = vsel %vm1239_vm10, %v1172_v27, %v1303_v35 }
 0x1ed   :  { %v1045_v21 = vadd.f32 %v2139_v15, %v2161_v30  ;;  %v1158_v22 = vadd.f32 %v2141_v16, %v2163_v29  ;;  %v1047_v45 = vadd.f32 %v2143_v17, %v2166_v36  ;;  %v1160_v2 = vadd.f32 %v2145_v18, %v2170_v32 }
 0x1ee   :  { %v1293_v33 = vmul.f32 0.2, %v1049_v48  ;;  %v1295_v27 = vmul.f32 0.2, %v1162_v47  ;;  %v1296_v0 = vmul.f32 0.2, %v1053_v41  ;;  %v1364_v15 = vsel %vm1236_vm11, %v1057_v26, %v1300_v42 }
 0x1ef   :  { %1404 = vmatpush1.xpose.msra.mxu0 %v1368_v52  ;;  %1474 = vmatpush1.xpose.msra.mxu1 %v1370_v19  ;;  %v1298_v34 = vmul.f32 0.2, %v1166_v46  ;;  %v1366_v16 = vsel %vm1238_vm12, %v1170_v31, %v1302_v51  ;;  %vm1232_vm15 = vcmp.gt.f32.partialorder %v1053_v41, 0.0  ;;  %vm1234_vm0 = vcmp.gt.f32.partialorder %v1166_v46, 0.0 }
 0x1f0   :  { %1405 = vmatprep.subr.mxu0 %v1365_v20  ;;  %1475 = vmatprep.subr.mxu1 %v1367_v56  ;;  %v1361_v38 = vsel %vm1233_vm13, %v2177_v44, %v1297_v40  ;;  %v1363_v37 = vsel %vm1235_vm14, %v2180_v55, %v1299_v39  ;;  %v1039_v17 = vadd.f32 %v2131_v11, %v2161_v30  ;;  %vm1229_vm1 = vcmp.gt.f32.partialorder %v1049_v48, 0.0 }
 0x1f1   :  { %v1152_v18 = vadd.f32 %v2133_v12, %v2163_v29  ;;  %vm1231_vm2 = vcmp.gt.f32.partialorder %v1162_v47, 0.0  ;;  %v1043_v23 = vadd.f32 %v2135_v13, %v2166_v36  ;;  %v1156_v63 = vadd.f32 %v2137_v14, %v2170_v32 }
 0x1f2   :  { %v1289_v26 = vmul.f32 0.2, %v1045_v21  ;;  %v1291_v44 = vmul.f32 0.2, %v1158_v22  ;;  %v1292_v31 = vmul.f32 0.2, %v1047_v45  ;;  %v1360_v28 = vsel %vm1232_vm15, %v1053_v41, %v1296_v0 }
 0x1f3   :  { %1406 = vmatpush1.xpose.msra.mxu0 %v1364_v15  ;;  %1476 = vmatpush1.xpose.msra.mxu1 %v1366_v16  ;;  %v1294_v55 = vmul.f32 0.2, %v1160_v2  ;;  %v1362_v11 = vsel %vm1234_vm0, %v1166_v46, %v1298_v34  ;;  %vm1228_vm3 = vcmp.gt.f32.partialorder %v1047_v45, 0.0  ;;  %vm1230_vm4 = vcmp.gt.f32.partialorder %v1160_v2, 0.0 }
 0x1f4   :  { %1407 = vmatprep.subr.mxu0 %v1361_v38  ;;  %1477 = vmatprep.subr.mxu1 %v1363_v37  ;;  %v1357_v12 = vsel %vm1229_vm1, %v1049_v48, %v1293_v33  ;;  %v1359_v35 = vsel %vm1231_vm2, %v1162_v47, %v1295_v27  ;;  %v1035_v13 = vadd.f32 %v2123_v7, %v2161_v30  ;;  %vm1225_vm5 = vcmp.gt.f32.partialorder %v1045_v21, 0.0 }
 0x1f5   :  { %v1148_v14 = vadd.f32 %v2125_v8, %v2163_v29  ;;  %vm1227_vm6 = vcmp.gt.f32.partialorder %v1158_v22, 0.0  ;;  %v1037_v43 = vadd.f32 %v2127_v9, %v2166_v36  ;;  %v1150_v54 = vadd.f32 %v2129_v10, %v2170_v32 }
 0x1f6   :  { %v1285_v24 = vmul.f32 0.2, %v1039_v17  ;;  %v1287_v25 = vmul.f32 0.2, %v1152_v18  ;;  %v1288_v48 = vmul.f32 0.2, %v1043_v23  ;;  %v1356_v41 = vsel %vm1228_vm3, %v1047_v45, %v1292_v31 }
 0x1f7   :  { %1408 = vmatpush1.xpose.msra.mxu0 %v1360_v28  ;;  %1478 = vmatpush1.xpose.msra.mxu1 %v1362_v11  ;;  %v1290_v47 = vmul.f32 0.2, %v1156_v63  ;;  %v1358_v7 = vsel %vm1230_vm4, %v1160_v2, %v1294_v55  ;;  %vm1224_vm7 = vcmp.gt.f32.partialorder %v1043_v23, 0.0  ;;  %vm1226_vm8 = vcmp.gt.f32.partialorder %v1156_v63, 0.0  ;;  %v2376_v31 = vld [vmem:[#allocation31_spill] sm:$0xff] }
 0x1f8   :  { %1409 = vmatprep.subr.mxu0 %v1357_v12  ;;  %1479 = vmatprep.subr.mxu1 %v1359_v35  ;;  %v1353_v8 = vsel %vm1225_vm5, %v1045_v21, %v1289_v26  ;;  %v1355_v46 = vsel %vm1227_vm6, %v1158_v22, %v1291_v44  ;;  %v1029_v9 = vadd.f32 %v2115_v3, %v2161_v30  ;;  %vm1221_vm9 = vcmp.gt.f32.partialorder %v1039_v17, 0.0  ;;  %v2375_v26 = vld [vmem:[#allocation30_spill] sm:$0xff] }
 0x1f9   :  { %v1142_v10 = vadd.f32 %v2117_v4, %v2163_v29  ;;  %vm1223_vm10 = vcmp.gt.f32.partialorder %v1152_v18, 0.0  ;;  %v1033_v40 = vadd.f32 %v2119_v5, %v2166_v36  ;;  %v1146_v39 = vadd.f32 %v2121_v6, %v2170_v32 }
 0x1fa   :  { %v1281_v42 = vmul.f32 0.2, %v1035_v13  ;;  %v1283_v51 = vmul.f32 0.2, %v1148_v14  ;;  %v1284_v52 = vmul.f32 0.2, %v1037_v43  ;;  %v1352_v20 = vsel %vm1224_vm7, %v1043_v23, %v1288_v48 }
 0x1fb   :  { %1410 = vmatpush1.xpose.msra.mxu0 %v1356_v41  ;;  %1480 = vmatpush1.xpose.msra.mxu1 %v1358_v7  ;;  %v1286_v19 = vmul.f32 0.2, %v1150_v54  ;;  %v1354_v3 = vsel %vm1226_vm8, %v1156_v63, %v1290_v47  ;;  %vm1220_vm11 = vcmp.gt.f32.partialorder %v1037_v43, 0.0  ;;  %vm1222_vm12 = vcmp.gt.f32.partialorder %v1150_v54, 0.0  ;;  %v2379_v48 = vld [vmem:[#allocation28_spill] sm:$0xff]  ;;  %v2380_v41 = vld [vmem:[#allocation29_spill] sm:$0xff] }
 0x1fc   :  { %1411 = vmatprep.subr.mxu0 %v1353_v8  ;;  %1481 = vmatprep.subr.mxu1 %v1355_v46  ;;  %v1349_v4 = vsel %vm1221_vm9, %v1039_v17, %v1285_v24  ;;  %v1351_v56 = vsel %vm1223_vm10, %v1152_v18, %v1287_v25  ;;  %v1025_v5 = vadd.f32 %v2107_v60, %v2161_v30  ;;  %vm1217_vm13 = vcmp.gt.f32.partialorder %v1035_v13, 0.0  ;;  %v2378_v24 = vld [vmem:[#allocation27_spill] sm:$0xff] }
 0x1fd   :  { %v1138_v6 = vadd.f32 %v2109_v61, %v2163_v29  ;;  %vm1219_vm14 = vcmp.gt.f32.partialorder %v1148_v14, 0.0  ;;  %v1027_v21 = vadd.f32 %v2111_v62, %v2166_v36  ;;  %v1140_v22 = vadd.f32 %v2113_v1, %v2170_v32 }
 0x1fe   :  { %v1277_v45 = vmul.f32 0.2, %v1029_v9  ;;  %v1279_v2 = vmul.f32 0.2, %v1142_v10  ;;  %v1280_v33 = vmul.f32 0.2, %v1033_v40  ;;  %v1348_v0 = vsel %vm1220_vm11, %v1037_v43, %v1284_v52 }
 0x1ff   :  { %1412 = vmatpush1.xpose.msra.mxu0 %v1352_v20  ;;  %1482 = vmatpush1.xpose.msra.mxu1 %v1354_v3  ;;  %v1282_v27 = vmul.f32 0.2, %v1146_v39  ;;  %v1350_v60 = vsel %vm1222_vm12, %v1150_v54, %v1286_v19  ;;  %vm1216_vm15 = vcmp.gt.f32.partialorder %v1033_v40, 0.0  ;;  %vm1218_vm0 = vcmp.gt.f32.partialorder %v1146_v39, 0.0  ;;  %v2377_v43 = vld [vmem:[#allocation26_spill] sm:$0xff]  ;;  %v2382_v20 = vld [vmem:[#allocation23_spill] sm:$0xff] }
 0x200   :  { %1413 = vmatprep.subr.mxu0 %v1349_v4  ;;  %1483 = vmatprep.subr.mxu1 %v1351_v56  ;;  %v1345_v61 = vsel %vm1217_vm13, %v1035_v13, %v1281_v42  ;;  %v1347_v34 = vsel %vm1219_vm14, %v1148_v14, %v1283_v51  ;;  %v1019_v62 = vadd.f32 %v2099_v53, %v2161_v30  ;;  %vm1213_vm1 = vcmp.gt.f32.partialorder %v1029_v9, 0.0  ;;  %v2381_v52 = vld [vmem:[#allocation22_spill] sm:$0xff]  ;;  %v2383_v4 = vld [vmem:[#allocation24_spill] sm:$0xff] }
 0x201   :  { %v1132_v1 = vadd.f32 %v2101_v57, %v2163_v29  ;;  %vm1215_vm2 = vcmp.gt.f32.partialorder %v1142_v10, 0.0  ;;  %v1023_v15 = vadd.f32 %v2103_v58, %v2166_v36  ;;  %v1136_v16 = vadd.f32 %v2105_v59, %v2170_v32 }
 0x202   :  { %v1273_v38 = vmul.f32 0.2, %v1025_v5  ;;  %v1275_v37 = vmul.f32 0.2, %v1138_v6  ;;  %v1276_v17 = vmul.f32 0.2, %v1027_v21  ;;  %v1344_v23 = vsel %vm1216_vm15, %v1033_v40, %v1280_v33 }
 0x203   :  { %1414 = vmatpush1.xpose.msra.mxu0 %v1348_v0  ;;  %1484 = vmatpush1.xpose.msra.mxu1 %v1350_v60  ;;  %v1278_v18 = vmul.f32 0.2, %v1140_v22  ;;  %v1346_v53 = vsel %vm1218_vm0, %v1146_v39, %v1282_v27  ;;  %vm1212_vm3 = vcmp.gt.f32.partialorder %v1027_v21, 0.0  ;;  %vm1214_vm4 = vcmp.gt.f32.partialorder %v1140_v22, 0.0 }
 0x204   :  { %1415 = vmatprep.subr.mxu0 %v1345_v61  ;;  %1485 = vmatprep.subr.mxu1 %v1347_v34  ;;  %v1341_v57 = vsel %vm1213_vm1, %v1029_v9, %v1277_v45  ;;  %v1343_v63 = vsel %vm1215_vm2, %v1142_v10, %v1279_v2  ;;  %v1015_v58 = vadd.f32 %v2091_v49, %v2161_v30  ;;  %vm1209_vm5 = vcmp.gt.f32.partialorder %v1025_v5, 0.0  ;;  %v2385_v61 = vld [vmem:[#allocation18_spill] sm:$0xff] }
 0x205   :  { %v1128_v59 = vadd.f32 %v2093_v50, %v2163_v29  ;;  %vm1211_vm6 = vcmp.gt.f32.partialorder %v1138_v6, 0.0  ;;  %v1017_v44 = vadd.f32 %v2375_v26, %v2166_v36  ;;  %v1130_v55 = vadd.f32 %v2376_v31, %v2170_v32  ;;  %v2389_v26 = vld [vmem:[#allocation14_spill] sm:$0xff]  ;;  %v2390_v31 = vld [vmem:[#allocation15_spill] sm:$0xff] }
 0x206   :  { %v1269_v28 = vmul.f32 0.2, %v1019_v62  ;;  %v1271_v11 = vmul.f32 0.2, %v1132_v1  ;;  %v1272_v12 = vmul.f32 0.2, %v1023_v15  ;;  %v1340_v13 = vsel %vm1212_vm3, %v1027_v21, %v1276_v17 }
 0x207   :  { %1416 = vmatpush1.xpose.msra.mxu0 %v1344_v23  ;;  %1486 = vmatpush1.xpose.msra.mxu1 %v1346_v53  ;;  %v1274_v35 = vmul.f32 0.2, %v1136_v16  ;;  %v1342_v49 = vsel %vm1214_vm4, %v1140_v22, %v1278_v18  ;;  %vm1208_vm7 = vcmp.gt.f32.partialorder %v1023_v15, 0.0  ;;  %vm1210_vm8 = vcmp.gt.f32.partialorder %v1136_v16, 0.0 }
 0x208   :  { %1417 = vmatprep.subr.mxu0 %v1341_v57  ;;  %1487 = vmatprep.subr.mxu1 %v1343_v63  ;;  %v1337_v50 = vsel %vm1209_vm5, %v1025_v5, %v1273_v38  ;;  %v1339_v14 = vsel %vm1211_vm6, %v1138_v6, %v1275_v37  ;;  %v1009_v54 = vadd.f32 %v2377_v43, %v2161_v30  ;;  %vm1205_vm9 = vcmp.gt.f32.partialorder %v1019_v62, 0.0  ;;  %v2384_v5 = vld [vmem:[#allocation25_spill] sm:$0xff] }
 0x209   :  { %v1122_v25 = vadd.f32 %v2378_v24, %v2163_v29  ;;  %vm1207_vm10 = vcmp.gt.f32.partialorder %v1132_v1, 0.0  ;;  %v1013_v47 = vadd.f32 %v2379_v48, %v2166_v36  ;;  %v1126_v7 = vadd.f32 %v2380_v41, %v2170_v32  ;;  %v2388_v38 = vld [vmem:[#allocation21_spill] sm:$0xff]  ;;  %v2393_v24 = vld [vmem:[#allocation11_spill] sm:$0xff]  ;;  %v2394_v48 = vld [vmem:[#allocation12_spill] sm:$0xff] }
 0x20a   :  { %v1265_v8 = vmul.f32 0.2, %v1015_v58  ;;  %v1267_v46 = vmul.f32 0.2, %v1128_v59  ;;  %v1268_v9 = vmul.f32 0.2, %v1017_v44  ;;  %v1336_v40 = vsel %vm1208_vm7, %v1023_v15, %v1272_v12 }
 0x20b   :  { %1418 = vmatpush1.xpose.msra.mxu0 %v1340_v13  ;;  %1488 = vmatpush1.xpose.msra.mxu1 %v1342_v49  ;;  %v1270_v10 = vmul.f32 0.2, %v1130_v55  ;;  %v1338_v39 = vsel %vm1210_vm8, %v1136_v16, %v1274_v35  ;;  %vm1204_vm11 = vcmp.gt.f32.partialorder %v1017_v44, 0.0  ;;  %vm1206_vm12 = vcmp.gt.f32.partialorder %v1130_v55, 0.0  ;;  %v2387_v15 = vld [vmem:[#allocation20_spill] sm:$0xff]  ;;  %v2392_v12 = vld [vmem:[#allocation17_spill] sm:$0xff] }
 0x20c   :  { %1419 = vmatprep.subr.mxu0 %v1337_v50  ;;  %1489 = vmatprep.subr.mxu1 %v1339_v14  ;;  %v1333_v42 = vsel %vm1205_vm9, %v1019_v62, %v1269_v28  ;;  %v1335_v51 = vsel %vm1207_vm10, %v1132_v1, %v1271_v11  ;;  %v1005_v19 = vadd.f32 %v2381_v52, %v2161_v30  ;;  %vm1201_vm13 = vcmp.gt.f32.partialorder %v1015_v58, 0.0  ;;  %v2386_v62 = vld [vmem:[#allocation19_spill] sm:$0xff]  ;;  %v2391_v28 = vld [vmem:[#allocation16_spill] sm:$0xff] }
 0x20d   :  { %v1118_v3 = vadd.f32 %v2382_v20, %v2163_v29  ;;  %vm1203_vm14 = vcmp.gt.f32.partialorder %v1128_v59, 0.0  ;;  %v1007_v56 = vadd.f32 %v2383_v4, %v2166_v36  ;;  %v1120_v6 = vadd.f32 %v2384_v5, %v2170_v32  ;;  %v2396_v5 = vld [vmem:[#allocation10_spill] sm:$0xff] }
 0x20e   :  { %v1261_v21 = vmul.f32 0.2, %v1009_v54  ;;  %v1263_v22 = vmul.f32 0.2, %v1122_v25  ;;  %v1264_v45 = vmul.f32 0.2, %v1013_v47  ;;  %v1332_v33 = vsel %vm1204_vm11, %v1017_v44, %v1268_v9 }
 0x20f   :  { %1420 = vmatpush1.xpose.msra.mxu0 %v1336_v40  ;;  %1490 = vmatpush1.xpose.msra.mxu1 %v1338_v39  ;;  %v1266_v2 = vmul.f32 0.2, %v1126_v7  ;;  %v1334_v27 = vsel %vm1206_vm12, %v1130_v55, %v1270_v10  ;;  %vm1200_vm15 = vcmp.gt.f32.partialorder %v1013_v47, 0.0  ;;  %vm1202_vm0 = vcmp.gt.f32.partialorder %v1126_v7, 0.0 }
 0x210   :  { %1421 = vmatprep.subr.mxu0 %v1333_v42  ;;  %1491 = vmatprep.subr.mxu1 %v1335_v51  ;;  %v1329_v0 = vsel %vm1201_vm13, %v1015_v58, %v1265_v8  ;;  %v1331_v60 = vsel %vm1203_vm14, %v1128_v59, %v1267_v46  ;;  %v999_v34 = vadd.f32 %v2385_v61, %v2161_v30  ;;  %vm1197_vm1 = vcmp.gt.f32.partialorder %v1009_v54, 0.0 }
 0x211   :  { %v1112_v1 = vadd.f32 %v2386_v62, %v2163_v29  ;;  %vm1199_vm2 = vcmp.gt.f32.partialorder %v1122_v25, 0.0  ;;  %v1003_v16 = vadd.f32 %v2387_v15, %v2166_v36  ;;  %v1116_v37 = vadd.f32 %v2388_v38, %v2170_v32 }
 0x212   :  { %v1257_v17 = vmul.f32 0.2, %v1005_v19  ;;  %v1259_v18 = vmul.f32 0.2, %v1118_v3  ;;  %v1260_v23 = vmul.f32 0.2, %v1007_v56  ;;  %v1328_v57 = vsel %vm1200_vm15, %v1013_v47, %v1264_v45 }
 0x213   :  { %1422 = vmatpush1.xpose.msra.mxu0 %v1332_v33  ;;  %1492 = vmatpush1.xpose.msra.mxu1 %v1334_v27  ;;  %v1262_v53 = vmul.f32 0.2, %v1120_v6  ;;  %v1330_v63 = vsel %vm1202_vm0, %v1126_v7, %v1266_v2  ;;  %vm1196_vm3 = vcmp.gt.f32.partialorder %v1007_v56, 0.0  ;;  %vm1198_vm4 = vcmp.gt.f32.partialorder %v1120_v6, 0.0 }
 0x214   :  { %1423 = vmatprep.subr.mxu0 %v1329_v0  ;;  %1493 = vmatprep.subr.mxu1 %v1331_v60  ;;  %v1325_v58 = vsel %vm1197_vm1, %v1009_v54, %v1261_v21  ;;  %v1327_v59 = vsel %vm1199_vm2, %v1122_v25, %v1263_v22  ;;  %v995_v44 = vadd.f32 %v2389_v26, %v2161_v30  ;;  %vm1193_vm5 = vcmp.gt.f32.partialorder %v1005_v19, 0.0 }
 0x215   :  { %v1108_v55 = vadd.f32 %v2390_v31, %v2163_v29  ;;  %vm1195_vm6 = vcmp.gt.f32.partialorder %v1118_v3, 0.0  ;;  %v997_v11 = vadd.f32 %v2391_v28, %v2166_v36  ;;  %v1110_v35 = vadd.f32 %v2392_v12, %v2170_v32 }
 0x216   :  { %v1253_v13 = vmul.f32 0.2, %v999_v34  ;;  %v1255_v49 = vmul.f32 0.2, %v1112_v1  ;;  %v1256_v50 = vmul.f32 0.2, %v1003_v16  ;;  %v1324_v43 = vsel %vm1196_vm3, %v1007_v56, %v1260_v23 }
 0x217   :  { %1424 = vmatpush1.xpose.msra.mxu0 %v1328_v57  ;;  %1494 = vmatpush1.xpose.msra.mxu1 %v1330_v63  ;;  %v1258_v14 = vmul.f32 0.2, %v1116_v37  ;;  %v1326_v30 = vsel %vm1198_vm4, %v1120_v6, %v1262_v53  ;;  %vm1192_vm7 = vcmp.gt.f32.partialorder %v1003_v16, 0.0  ;;  %vm1194_vm8 = vcmp.gt.f32.partialorder %v1116_v37, 0.0  ;;  %v2397_v6 = vld [vmem:[#allocation13_spill] sm:$0xff] }
 0x218   :  { %1425 = vmatprep.subr.mxu0 %v1325_v58  ;;  %1495 = vmatprep.subr.mxu1 %v1327_v59  ;;  %v1321_v29 = vsel %vm1193_vm5, %v1005_v19, %v1257_v17  ;;  %v1323_v54 = vsel %vm1195_vm6, %v1118_v3, %v1259_v18  ;;  %vm1189_vm9 = vcmp.gt.f32.partialorder %v999_v34, 0.0  ;;  %vm1191_vm10 = vcmp.gt.f32.partialorder %v1112_v1, 0.0 }
 0x219   :  { %v993_v25 = vadd.f32 %v2393_v24, %v2166_v36  ;;  %v1106_v47 = vadd.f32 %v2394_v48, %v2170_v32  ;;  %v1249_v41 = vmul.f32 0.2, %v995_v44  ;;  %v1251_v7 = vmul.f32 0.2, %v1108_v55  ;;  %v2395_v36 = vld [vmem:[#allocation9_spill] sm:$0xff] }
 0x21a   :  { %v1252_v8 = vmul.f32 0.2, %v997_v11  ;;  %v1254_v46 = vmul.f32 0.2, %v1110_v35  ;;  %v1320_v9 = vsel %vm1192_vm7, %v1003_v16, %v1256_v50  ;;  %v1322_v10 = vsel %vm1194_vm8, %v1116_v37, %v1258_v14 }
 0x21b   :  { %1426 = vmatpush1.xpose.msra.mxu0 %v1324_v43  ;;  %1496 = vmatpush1.xpose.msra.mxu1 %v1326_v30  ;;  %vm1188_vm11 = vcmp.gt.f32.partialorder %v997_v11, 0.0  ;;  %vm1190_vm12 = vcmp.gt.f32.partialorder %v1110_v35, 0.0  ;;  %v1317_v40 = vsel %vm1189_vm9, %v999_v34, %v1253_v13  ;;  %v1319_v39 = vsel %vm1191_vm10, %v1112_v1, %v1255_v49 }
 0x21c   :  { %1427 = vmatprep.subr.mxu0 %v1321_v29  ;;  %1497 = vmatprep.subr.mxu1 %v1323_v54  ;;  %vm1185_vm13 = vcmp.gt.f32.partialorder %v995_v44, 0.0  ;;  %vm1187_vm14 = vcmp.gt.f32.partialorder %v1108_v55, 0.0  ;;  %v1391_v32 = vsub.s32 4, %v2395_v36  ;;  %v1248_v42 = vmul.f32 0.2, %v993_v25 }
 0x21d   :  { %v1250_v51 = vmul.f32 0.2, %v1106_v47  ;;  %v1316_v52 = vsel %vm1188_vm11, %v997_v11, %v1252_v8  ;;  %v1318_v19 = vsel %vm1190_vm12, %v1110_v35, %v1254_v46  ;;  %vm1184_vm15 = vcmp.gt.f32.partialorder %v993_v25, 0.0 }
 0x21e   :  { %vm1186_vm0 = vcmp.gt.f32.partialorder %v1106_v47, 0.0  ;;  %v1313_v20 = vsel %vm1185_vm13, %v995_v44, %v1249_v41  ;;  %v1315_v3 = vsel %vm1187_vm14, %v1108_v55, %v1251_v7  ;;  %v1312_v4 = vsel %vm1184_vm15, %v993_v25, %v1248_v42 }
 0x21f   :  { %1428 = vmatpush1.xpose.msra.mxu0 %v1320_v9  ;;  %1498 = vmatpush1.xpose.msra.mxu1 %v1322_v10  ;;  %v1314_v56 = vsel %vm1186_vm0, %v1106_v47, %v1250_v51  ;;  %v1384_v21 = vrot.slane %v2397_v6, %v2396_v5  ;;  %v1392_v22 = vrot.slane %v2397_v6, %v1391_v32  ;;  %v1379_v45 = vstv %s2344_s8 }
 0x220   :  { %1429 = vmatprep.subr.mxu0 %v1317_v40  ;;  %1499 = vmatprep.subr.mxu1 %v1319_v39 }
 0x223   :  { %1430 = vmatpush1.xpose.msra.mxu0 %v1316_v52  ;;  %1500 = vmatpush1.xpose.msra.mxu1 %v1318_v19 }
 0x224   :  { %1431 = vmatprep.subr.mxu0 %v1313_v20  ;;  %1501 = vmatprep.subr.mxu1 %v1315_v3 }
 0x227   :  { %1432 = vmatpush1.xpose.msra.mxu0 %v1312_v4  ;;  %1502 = vmatpush1.xpose.msra.mxu1 %v1314_v56 }
 0x22a   :  { %1466 = vmatmul.mubr.f32.vlgmr.msra.gmra.mxu0 %v1384_v21  ;;  %1536 = vmatmul.mubr.f32.vlgmr.msra.gmra.mxu1 %v1392_v22 }
 0x2ea   :  { %v1467_v2 = vpop.f32.mrf.mxu0  ;;  %v1537_v33 = vpop.f32.mrf.mxu1 }
 0x2eb   :  { %v1468_v27 = vadd.f32 %v1467_v2, %v1379_v45 }
 0x2ec   :  { %v1469_v0 = vpop.f32.mrf.mxu0  ;;  %v1539_v60 = vpop.f32.mrf.mxu1 }
 0x2ed   :  { %v1538_v61 = vadd.f32 %v1537_v33, %v1468_v27 }
 0x2ef   :  { %1541 = vst [vmem:[#allocation6] sm:$0x1] %v1538_v61 }
 0x2f0   :  { %1779 = shalt.err (!%p1776_p9)
}
 0x2f1   :  { %1551 = dma.vmem_to_hbm [thread:$0]  %s1549_s20, 16, %s2345_s9, [#allocation5]  }
 0x2f2   :  { %1790 = dma.done.wait [#allocation5], 16  }
 0x2f3   :  { %1791 = vsyncadd [#allocation5], 4294967280 }
 0x2f4   :  { %1555 = vsyncpa [#allocation4], 1 }
 0x2f5   :  { %1556 = vsyncpa [#allocation5], 1 }

</bundles_post_ra>
